<compile_context>
chip_gen: v5e
topology: v5e:2x2
jax: 0.10.0
libtpu: 0.0.40
codegen_flags: <defaults>
</compile_context>

<pallas_src>
import functools
import math

import jax
import jax.numpy as jnp
from jax.experimental import pallas as pl
from jax.experimental.pallas import tpu as pltpu


# ----------------------------- helpers --------------------------------------

def _ceil_to(x, m):
    return ((x + m - 1) // m) * m


def _row_tile(m):
    for t in (512, 256, 128, 64, 32, 16, 8):
        if m % t == 0:
            return t
    return m


# Preferred matmul tiles (MXU-friendly; collapse to full dims at toy sizes).
_TM, _TN, _TK = 512, 768, 768


def _pick_vmem_limit():
    # v7x has only 64 MiB VMEM per TensorCore -> stay near 48 MiB there;
    # v5e/v6e have 128 MiB physical -> allow more headroom for big tiles.
    try:
        cap = pltpu.get_tpu_info().vmem_capacity_bytes
        if cap <= 64 * 1024 * 1024:
            return 48 * 1024 * 1024
        return 96 * 1024 * 1024
    except Exception:
        return 48 * 1024 * 1024


_VMEM_LIMIT = _pick_vmem_limit()


def _gelu_tanh(y):
    # TODO(synk): HF BERT default is exact erf-GELU; tanh approximation here.
    c = 0.7978845608028654  # sqrt(2/pi)
    return 0.5 * y * (1.0 + jnp.tanh(c * (y + 0.044715 * y * y * y)))


# --------------------------- fused linear kernels ----------------------------
# y = act(x @ w + b); x bf16, w bf16, b f32; MXU in bf16, f32 accumulation.

def _linear_kernel_1k(x_ref, w_ref, b_ref, o_ref, *, act):
    # Single K step: no accumulator scratch, no init/finalize pl.when.
    y = jnp.dot(x_ref[...], w_ref[...], preferred_element_type=jnp.float32)
    y = y + b_ref[...]
    if act == "gelu":
        y = _gelu_tanh(y)
    o_ref[...] = y.astype(o_ref.dtype)


def _linear_kernel_mk(x_ref, w_ref, b_ref, o_ref, acc_ref, *, act):
    @pl.when(pl.program_id(2) == 0)
    def _():
        acc_ref[...] = jnp.zeros_like(acc_ref)

    acc_ref[...] += jnp.dot(x_ref[...], w_ref[...],
                            preferred_element_type=jnp.float32)

    @pl.when(pl.program_id(2) == pl.num_programs(2) - 1)
    def _():
        y = acc_ref[...] + b_ref[...]
        if act == "gelu":
            y = _gelu_tanh(y)
        o_ref[...] = y.astype(o_ref.dtype)


def pallas_linear(x, w, b, *, act=None, out_dtype=jnp.bfloat16):
    """y = act(x @ w + b). x:(M,K) bf16, w:(K,N) bf16, b:(N,) f32."""
    M, K = x.shape
    Kw, N = w.shape
    assert K == Kw
    x = x.astype(jnp.bfloat16)

    # Row tiling (multiple of 8 sublanes).
    Mp0 = _ceil_to(M, 8)
    tm = min(_TM, Mp0)
    Mp = _ceil_to(Mp0, tm)

    # Lane-dense output tiling (pads the 5-wide classifier to 128 lanes).
    Np0 = _ceil_to(N, 128)
    tn = min(_TN, Np0)
    Np = _ceil_to(Np0, tn)

    # Reduction tiling.
    if K <= _TK:
        tk, Kp = K, K
    else:
        tk = _TK
        Kp = _ceil_to(K, tk)
    nk = Kp // tk

    xp = x if (Mp, Kp) == (M, K) else jnp.pad(x, ((0, Mp - M), (0, Kp - K)))
    wp = w if (Kp, Np) == (K, N) else jnp.pad(w, ((0, Kp - K), (0, Np - N)))
    bp = b.reshape(1, N)
    if Np != N:
        bp = jnp.pad(bp, ((0, 0), (0, Np - N)))

    if nk == 1:
        out = pl.pallas_call(
            functools.partial(_linear_kernel_1k, act=act),
            out_shape=jax.ShapeDtypeStruct((Mp, Np), out_dtype),
            grid=(Mp // tm, Np // tn),
            in_specs=[
                pl.BlockSpec((tm, Kp), lambda i, j: (i, 0)),
                pl.BlockSpec((Kp, tn), lambda i, j: (0, j)),
                pl.BlockSpec((1, tn), lambda i, j: (0, j)),
            ],
            out_specs=pl.BlockSpec((tm, tn), lambda i, j: (i, j)),
            compiler_params=pltpu.CompilerParams(
                dimension_semantics=("parallel", "parallel"),
                vmem_limit_bytes=_VMEM_LIMIT,
            ),
        )(xp, wp, bp)
    else:
        out = pl.pallas_call(
            functools.partial(_linear_kernel_mk, act=act),
            out_shape=jax.ShapeDtypeStruct((Mp, Np), out_dtype),
            grid=(Mp // tm, Np // tn, nk),
            in_specs=[
                pl.BlockSpec((tm, tk), lambda i, j, k: (i, k)),
                pl.BlockSpec((tk, tn), lambda i, j, k: (k, j)),
                pl.BlockSpec((1, tn), lambda i, j, k: (0, j)),
            ],
            out_specs=pl.BlockSpec((tm, tn), lambda i, j, k: (i, j)),
            scratch_shapes=[pltpu.VMEM((tm, tn), jnp.float32)],
            compiler_params=pltpu.CompilerParams(
                dimension_semantics=("parallel", "parallel", "arbitrary"),
                vmem_limit_bytes=_VMEM_LIMIT,
            ),
        )(xp, wp, bp)

    if (Mp, Np) != (M, N):
        out = out[:M, :N]
    return out


# ----------------- matmul with fused residual-add + LayerNorm ----------------
# out = LayerNorm(x @ w + b + residual) over the last dim (tn = full N so the
# whole row is resident in the epilogue). Used for the wo and w2 projections.

def _linear_ln_epilogue(y, r_ref, g_ref, bt_ref, o_ref):
    y = y + r_ref[...].astype(jnp.float32)
    mean = jnp.mean(y, axis=-1, keepdims=True)
    var = jnp.mean(jnp.square(y - mean), axis=-1, keepdims=True)
    inv = jax.lax.rsqrt(var + 1e-12)
    o_ref[...] = ((y - mean) * inv * g_ref[...] + bt_ref[...]).astype(o_ref.dtype)


def _linear_ln_kernel_1k(x_ref, w_ref, b_ref, r_ref, g_ref, bt_ref, o_ref):
    y = jnp.dot(x_ref[...], w_ref[...], preferred_element_type=jnp.float32)
    _linear_ln_epilogue(y + b_ref[...], r_ref, g_ref, bt_ref, o_ref)


def _linear_ln_kernel_mk(x_ref, w_ref, b_ref, r_ref, g_ref, bt_ref, o_ref,
                         acc_ref):
    @pl.when(pl.program_id(1) == 0)
    def _():
        acc_ref[...] = jnp.zeros_like(acc_ref)

    acc_ref[...] += jnp.dot(x_ref[...], w_ref[...],
                            preferred_element_type=jnp.float32)

    @pl.when(pl.program_id(1) == pl.num_programs(1) - 1)
    def _():
        _linear_ln_epilogue(acc_ref[...] + b_ref[...], r_ref, g_ref, bt_ref,
                            o_ref)


def pallas_linear_add_ln(x, w, b, res, gamma, beta, *, out_dtype=jnp.bfloat16):
    """LayerNorm(x @ w + b + res). x:(M,K) bf16, w:(K,N) bf16, res:(M,N) bf16."""
    M, K = x.shape
    Kw, N = w.shape
    assert K == Kw and res.shape == (M, N)
    x = x.astype(jnp.bfloat16)
    res = res.astype(jnp.bfloat16)

    Mp0 = _ceil_to(M, 8)
    tm = min(_TM, Mp0)
    Mp = _ceil_to(Mp0, tm)

    if K <= _TK:
        tk, Kp = K, K
    else:
        tk = _TK
        Kp = _ceil_to(K, tk)
    nk = Kp // tk

    xp = x if (Mp, Kp) == (M, K) else jnp.pad(x, ((0, Mp - M), (0, Kp - K)))
    wp = w if Kp == K else jnp.pad(w, ((0, Kp - K), (0, 0)))
    rp = res if Mp == M else jnp.pad(res, ((0, Mp - M), (0, 0)))
    bp = b.reshape(1, N)
    gp = gamma.reshape(1, N)
    btp = beta.reshape(1, N)

    if nk == 1:
        out = pl.pallas_call(
            _linear_ln_kernel_1k,
            out_shape=jax.ShapeDtypeStruct((Mp, N), out_dtype),
            grid=(Mp // tm,),
            in_specs=[
                pl.BlockSpec((tm, Kp), lambda i: (i, 0)),
                pl.BlockSpec((Kp, N), lambda i: (0, 0)),
                pl.BlockSpec((1, N), lambda i: (0, 0)),
                pl.BlockSpec((tm, N), lambda i: (i, 0)),
                pl.BlockSpec((1, N), lambda i: (0, 0)),
                pl.BlockSpec((1, N), lambda i: (0, 0)),
            ],
            out_specs=pl.BlockSpec((tm, N), lambda i: (i, 0)),
            compiler_params=pltpu.CompilerParams(
                dimension_semantics=("parallel",),
                vmem_limit_bytes=_VMEM_LIMIT,
            ),
        )(xp, wp, bp, rp, gp, btp)
    else:
        out = pl.pallas_call(
            _linear_ln_kernel_mk,
            out_shape=jax.ShapeDtypeStruct((Mp, N), out_dtype),
            grid=(Mp // tm, nk),
            in_specs=[
                pl.BlockSpec((tm, tk), lambda i, k: (i, k)),
                pl.BlockSpec((tk, N), lambda i, k: (k, 0)),
                pl.BlockSpec((1, N), lambda i, k: (0, 0)),
                pl.BlockSpec((tm, N), lambda i, k: (i, 0)),
                pl.BlockSpec((1, N), lambda i, k: (0, 0)),
                pl.BlockSpec((1, N), lambda i, k: (0, 0)),
            ],
            out_specs=pl.BlockSpec((tm, N), lambda i, k: (i, 0)),
            scratch_shapes=[pltpu.VMEM((tm, N), jnp.float32)],
            compiler_params=pltpu.CompilerParams(
                dimension_semantics=("parallel", "arbitrary"),
                vmem_limit_bytes=_VMEM_LIMIT,
            ),
        )(xp, wp, bp, rp, gp, btp)

    if Mp != M:
        out = out[:M]
    return out


# ------------------ embedding add (word+pos+type) + LayerNorm ----------------

def _emb_ln_kernel(w_ref, p_ref, t_ref, g_ref, b_ref, o_ref):
    x = w_ref[0] + p_ref[...] + t_ref[0]          # (ts, D) f32
    mean = jnp.mean(x, axis=-1, keepdims=True)
    var = jnp.mean(jnp.square(x - mean), axis=-1, keepdims=True)
    inv = jax.lax.rsqrt(var + 1e-12)
    o_ref[0] = ((x - mean) * inv * g_ref[...] + b_ref[...]).astype(o_ref.dtype)


def pallas_emb_layernorm(word, pos, tok, gamma, beta, *, out_dtype=jnp.bfloat16):
    """LayerNorm(word + pos + type). word/tok:(B,S,D) f32, pos:(S,D) f32."""
    B, S, D = word.shape
    ts = _row_tile(S)
    return pl.pallas_call(
        _emb_ln_kernel,
        out_shape=jax.ShapeDtypeStruct((B, S, D), out_dtype),
        grid=(B, S // ts),
        in_specs=[
            pl.BlockSpec((1, ts, D), lambda b, j: (b, j, 0)),
            pl.BlockSpec((ts, D), lambda b, j: (j, 0)),
            pl.BlockSpec((1, ts, D), lambda b, j: (b, j, 0)),
            pl.BlockSpec((1, D), lambda b, j: (0, 0)),
            pl.BlockSpec((1, D), lambda b, j: (0, 0)),
        ],
        out_specs=pl.BlockSpec((1, ts, D), lambda b, j: (b, j, 0)),
        compiler_params=pltpu.CompilerParams(
            dimension_semantics=("parallel", "parallel"),
            vmem_limit_bytes=_VMEM_LIMIT,
        ),
    )(word, pos, tok, gamma, beta)


# --------------------------- attention kernel --------------------------------
# Head-major: one (batch, head) pair per grid point; Q/K/V arrive as
# (B, H, S, Dh) bf16 blocks, scores / softmax in f32, 1/sqrt(Dh) folded into Q.
# TODO(synk): flash-style KV-tiled online softmax for long sequences (v7x VMEM).

def _attention_kernel(q_ref, k_ref, v_ref, m_ref, o_ref, *, scale):
    q = q_ref[0, 0] * scale                        # (S, Dh) bf16, scale folded
    k = k_ref[0, 0]
    v = v_ref[0, 0]
    s = jax.lax.dot_general(q, k, (((1,), (1,)), ((), ())),
                            preferred_element_type=jnp.float32)   # (S, S)
    s = s + m_ref[0]                               # additive padding mask (1, S)
    s = s - jnp.max(s, axis=-1, keepdims=True)
    p = jnp.exp(s)
    p = p / jnp.sum(p, axis=-1, keepdims=True)     # exact normalization
    o_ref[0, 0] = jnp.dot(p.astype(jnp.bfloat16), v,
                          preferred_element_type=jnp.float32).astype(o_ref.dtype)


def pallas_attention(q, k, v, mask_add, *, scale):
    # q/k/v: (B, H, S, Dh) bf16 ; mask_add: (B, 1, S) additive (-10000 on pad)
    B, H, S, Dh = q.shape
    return pl.pallas_call(
        functools.partial(_attention_kernel, scale=scale),
        out_shape=jax.ShapeDtypeStruct((B, H, S, Dh), jnp.bfloat16),
        grid=(B, H),
        in_specs=[
            pl.BlockSpec((1, 1, S, Dh), lambda b, h: (b, h, 0, 0)),
            pl.BlockSpec((1, 1, S, Dh), lambda b, h: (b, h, 0, 0)),
            pl.BlockSpec((1, 1, S, Dh), lambda b, h: (b, h, 0, 0)),
            pl.BlockSpec((1, 1, S), lambda b, h: (b, 0, 0)),
        ],
        out_specs=pl.BlockSpec((1, 1, S, Dh), lambda b, h: (b, h, 0, 0)),
        compiler_params=pltpu.CompilerParams(
            dimension_semantics=("parallel", "parallel"),
            vmem_limit_bytes=_VMEM_LIMIT,
        ),
    )(q, k, v, mask_add)


# --------------------------- model (JAX glue) -------------------------------

CFG = dict(
    vocab=128,        # stand-in for bert-base-chinese vocab (synthetic weights)
    type_vocab=2,
    max_pos=32,
    hidden=32,        # stand-in for 768
    heads=2,
    layers=2,         # stand-in for 12
    intermediate=64,  # stand-in for 3072
    ner_labels=5,
)


def init_params(key, cfg):
    keys = iter(jax.random.split(key, 128))

    def norm(shape):
        return jax.random.normal(next(keys), shape, jnp.float32) * 0.02

    D, I = cfg["hidden"], cfg["intermediate"]
    params = {
        "word_emb": norm((cfg["vocab"], D)),
        "pos_emb": norm((cfg["max_pos"], D)),
        "type_emb": norm((cfg["type_vocab"], D)),
        "emb_ln_g": jnp.ones((1, D), jnp.float32),
        "emb_ln_b": jnp.zeros((1, D), jnp.float32),
        "cls_w": norm((D, cfg["ner_labels"])).astype(jnp.bfloat16),
        "cls_b": jnp.zeros((cfg["ner_labels"],), jnp.float32),
        "layers": [],
    }
    for _ in range(cfg["layers"]):
        params["layers"].append({
            # Q|K|V fused into one projection.
            "wqkv": norm((D, 3 * D)).astype(jnp.bfloat16),
            "bqkv": jnp.zeros((3 * D,), jnp.float32),
            "wo": norm((D, D)).astype(jnp.bfloat16),
            "bo": jnp.zeros((D,), jnp.float32),
            "ln1_g": jnp.ones((1, D), jnp.float32),
            "ln1_b": jnp.zeros((1, D), jnp.float32),
            "w1": norm((D, I)).astype(jnp.bfloat16),
            "b1": jnp.zeros((I,), jnp.float32),
            "w2": norm((I, D)).astype(jnp.bfloat16),
            "b2": jnp.zeros((D,), jnp.float32),
            "ln2_g": jnp.ones((1, D), jnp.float32),
            "ln2_b": jnp.zeros((1, D), jnp.float32),
        })
    return params


def bert_ner_forward(params, input_ids, token_type_ids, attention_mask, cfg):
    B, S = input_ids.shape
    D, H = cfg["hidden"], cfg["heads"]
    Dh = D // H
    M = B * S

    # --- embeddings: gathers in XLA, word+pos+type add fused into LN kernel ---
    pos_ids = jnp.arange(S)
    word = params["word_emb"][input_ids]                 # (B, S, D) f32
    tok = params["type_emb"][token_type_ids]             # (B, S, D) f32
    pos = params["pos_emb"][pos_ids]                     # (S, D) f32
    x = pallas_emb_layernorm(word, pos, tok,
                             params["emb_ln_g"], params["emb_ln_b"])
    x = x.reshape(M, D)                                  # (M, D) bf16

    # BERT-style extended additive attention mask: (1 - mask) * -10000
    mask_add = ((1.0 - attention_mask.astype(jnp.float32)) * -10000.0
                ).reshape(B, 1, S)
    scale = 1.0 / math.sqrt(Dh)

    for lyr in params["layers"]:
        # Fused QKV projection (bf16 in/out), head-major re-layout in wrapper.
        qkv = pallas_linear(x, lyr["wqkv"], lyr["bqkv"])            # (M, 3D)
        qkv = qkv.reshape(B, S, 3, H, Dh)
        q = jnp.transpose(qkv[:, :, 0], (0, 2, 1, 3))               # (B,H,S,Dh)
        k = jnp.transpose(qkv[:, :, 1], (0, 2, 1, 3))
        v = jnp.transpose(qkv[:, :, 2], (0, 2, 1, 3))
        ctx = pallas_attention(q, k, v, mask_add, scale=scale)      # (B,H,S,Dh)
        ctx = jnp.transpose(ctx, (0, 2, 1, 3)).reshape(M, D)        # (M, D)

        # TODO(synk): optionally fuse the (D,D) output projection into the
        # attention kernel epilogue to save one (M,D) HBM round trip.
        # Output projection with residual-add + LayerNorm fused in the epilogue.
        x = pallas_linear_add_ln(ctx, lyr["wo"], lyr["bo"], x,
                                 lyr["ln1_g"], lyr["ln1_b"])

        # FFN: bias + GELU fused into the up-projection; add+LN fused into the
        # down-projection epilogue.
        h = pallas_linear(x, lyr["w1"], lyr["b1"], act="gelu")
        x = pallas_linear_add_ln(h, lyr["w2"], lyr["b2"], x,
                                 lyr["ln2_g"], lyr["ln2_b"])

    # Classifier over last_hidden_state (output padded to 128 lanes inside the
    # kernel and sliced back), f32 logits, then the (B*S, C) view.
    logits = pallas_linear(x, params["cls_w"], params["cls_b"],
                           out_dtype=jnp.float32)
    return logits  # shape (batch_size * seq_len, ner_labels)


# --------------------------------- main -------------------------------------

if __name__ == "__main__":
    key = jax.random.PRNGKey(0)
    pkey, ikey = jax.random.split(key)

    params = init_params(pkey, CFG)

    B, S = 2, 8
    input_ids = jax.random.randint(ikey, (B, S), 0, CFG["vocab"], dtype=jnp.int32)
    token_type_ids = jnp.zeros((B, S), jnp.int32)
    attention_mask = jnp.ones((B, S), jnp.int32).at[1, S - 2:].set(0)  # pad tail

    fwd = jax.jit(functools.partial(bert_ner_forward, cfg=CFG))
    out = fwd(params, input_ids, token_type_ids, attention_mask)
    out = jax.block_until_ready(out)

    assert out.shape == (B * S, CFG["ner_labels"]), out.shape
    assert out.dtype == jnp.float32
    print("KERNEL_OK")
</pallas_src>

<mosaic_0001>
module attributes {stable_mosaic.version = 11 : i64} {
  func.func @_emb_ln_kernel(%arg0: i32, %arg1: i32, %arg2: memref<1x8x32xf32, #tpu.memory_space<vmem>>, %arg3: memref<8x32xf32, #tpu.memory_space<vmem>>, %arg4: memref<1x8x32xf32, #tpu.memory_space<vmem>>, %arg5: memref<1x32xf32, #tpu.memory_space<vmem>>, %arg6: memref<1x32xf32, #tpu.memory_space<vmem>>, %arg7: memref<1x8x32xbf16, #tpu.memory_space<vmem>>) attributes {dimension_semantics = [#tpu.dimension_semantics<parallel>, #tpu.dimension_semantics<parallel>], iteration_bounds = array<i64: 2, 1>, scalar_prefetch = 0 : i64, scratch_operands = 0 : i64, tpu.core_type = #tpu.core_type<tc>, window_params = [{transform_indices = @transform_0, window_bounds = array<i64: 1, 8, 32>}, {transform_indices = @transform_1, window_bounds = array<i64: 8, 32>}, {transform_indices = @transform_2, window_bounds = array<i64: 1, 8, 32>}, {pipeline_mode = #tpu.pipeline_mode<synchronous>, transform_indices = @transform_3, window_bounds = array<i64: 1, 32>}, {pipeline_mode = #tpu.pipeline_mode<synchronous>, transform_indices = @transform_4, window_bounds = array<i64: 1, 32>}, {transform_indices = @transform_5, window_bounds = array<i64: 1, 8, 32>}]} {
    %c0 = arith.constant 0 : index
    %c0_0 = arith.constant 0 : index
    %c0_1 = arith.constant 0 : index
    %0 = vector.load %arg2[%c0, %c0_0, %c0_1] : memref<1x8x32xf32, #tpu.memory_space<vmem>>, vector<1x8x32xf32>
    %1 = vector.shape_cast %0 : vector<1x8x32xf32> to vector<8x32xf32>
    %c0_2 = arith.constant 0 : index
    %c0_3 = arith.constant 0 : index
    %2 = vector.load %arg3[%c0_2, %c0_3] : memref<8x32xf32, #tpu.memory_space<vmem>>, vector<8x32xf32>
    %3 = arith.addf %1, %2 : vector<8x32xf32>
    %c0_4 = arith.constant 0 : index
    %c0_5 = arith.constant 0 : index
    %c0_6 = arith.constant 0 : index
    %4 = vector.load %arg4[%c0_4, %c0_5, %c0_6] : memref<1x8x32xf32, #tpu.memory_space<vmem>>, vector<1x8x32xf32>
    %5 = vector.shape_cast %4 : vector<1x8x32xf32> to vector<8x32xf32>
    %6 = arith.addf %3, %5 : vector<8x32xf32>
    %cst = arith.constant dense<0.000000e+00> : vector<8xf32>
    %7 = vector.multi_reduction <add>, %6, %cst [1] : vector<8x32xf32> to vector<8xf32>
    %8 = vector.shape_cast %7 : vector<8xf32> to vector<8x1xf32>
    %cst_7 = arith.constant 3.200000e+01 : f32
    %9 = vector.broadcast %cst_7 : f32 to vector<8x1xf32>
    %10 = arith.divf %8, %9 : vector<8x1xf32>
    %11 = vector.broadcast %10 : vector<8x1xf32> to vector<8x32xf32>
    %12 = arith.subf %6, %11 : vector<8x32xf32>
    %13 = arith.mulf %12, %12 : vector<8x32xf32>
    %cst_8 = arith.constant dense<0.000000e+00> : vector<8xf32>
    %14 = vector.multi_reduction <add>, %13, %cst_8 [1] : vector<8x32xf32> to vector<8xf32>
    %15 = vector.shape_cast %14 : vector<8xf32> to vector<8x1xf32>
    %cst_9 = arith.constant 3.200000e+01 : f32
    %16 = vector.broadcast %cst_9 : f32 to vector<8x1xf32>
    %17 = arith.divf %15, %16 : vector<8x1xf32>
    %cst_10 = arith.constant 9.99999996E-13 : f32
    %18 = vector.broadcast %cst_10 : f32 to vector<8x1xf32>
    %19 = arith.addf %17, %18 : vector<8x1xf32>
    %20 = math.rsqrt %19 : vector<8x1xf32>
    %21 = vector.broadcast %10 : vector<8x1xf32> to vector<8x32xf32>
    %22 = arith.subf %6, %21 : vector<8x32xf32>
    %23 = vector.broadcast %20 : vector<8x1xf32> to vector<8x32xf32>
    %24 = arith.mulf %22, %23 : vector<8x32xf32>
    %c0_11 = arith.constant 0 : index
    %c0_12 = arith.constant 0 : index
    %25 = vector.load %arg5[%c0_11, %c0_12] : memref<1x32xf32, #tpu.memory_space<vmem>>, vector<1x32xf32>
    %26 = vector.broadcast %25 : vector<1x32xf32> to vector<8x32xf32>
    %27 = arith.mulf %24, %26 : vector<8x32xf32>
    %c0_13 = arith.constant 0 : index
    %c0_14 = arith.constant 0 : index
    %28 = vector.load %arg6[%c0_13, %c0_14] : memref<1x32xf32, #tpu.memory_space<vmem>>, vector<1x32xf32>
    %29 = vector.broadcast %28 : vector<1x32xf32> to vector<8x32xf32>
    %30 = arith.addf %27, %29 : vector<8x32xf32>
    %31 = arith.truncf %30 : vector<8x32xf32> to vector<8x32xbf16>
    %c0_15 = arith.constant 0 : index
    %c0_16 = arith.constant 0 : index
    %c0_17 = arith.constant 0 : index
    %32 = vector.load %arg7[%c0_15, %c0_16, %c0_17] : memref<1x8x32xbf16, #tpu.memory_space<vmem>>, vector<1x8x32xbf16>
    %33 = vector.shape_cast %32 : vector<1x8x32xbf16> to vector<8x32xbf16>
    %34 = vector.shape_cast %31 : vector<8x32xbf16> to vector<1x8x32xbf16>
    tpu.vector_store %arg7[%c0_15, %c0_16, %c0_17], %34 {strides = array<i32>} : memref<1x8x32xbf16, #tpu.memory_space<vmem>>, vector<1x8x32xbf16>,
    return
  }
  func.func @transform_0(%arg0: i32, %arg1: i32) -> (i32, i32, i32) {
    %c0_i32 = arith.constant 0 : i32
    %c0_i32_0 = arith.constant 0 : i32
    return %arg0, %arg1, %c0_i32 : i32, i32, i32
  }
  func.func @transform_1(%arg0: i32, %arg1: i32) -> (i32, i32) {
    %c0_i32 = arith.constant 0 : i32
    %c0_i32_0 = arith.constant 0 : i32
    return %arg1, %c0_i32 : i32, i32
  }
  func.func @transform_2(%arg0: i32, %arg1: i32) -> (i32, i32, i32) {
    %c0_i32 = arith.constant 0 : i32
    %c0_i32_0 = arith.constant 0 : i32
    return %arg0, %arg1, %c0_i32 : i32, i32, i32
  }
  func.func @transform_3(%arg0: i32, %arg1: i32) -> (i32, i32) {
    %c0_i32 = arith.constant 0 : i32
    %c0_i32_0 = arith.constant 0 : i32
    %c0_i32_1 = arith.constant 0 : i32
    return %c0_i32, %c0_i32_0 : i32, i32
  }
  func.func @transform_4(%arg0: i32, %arg1: i32) -> (i32, i32) {
    %c0_i32 = arith.constant 0 : i32
    %c0_i32_0 = arith.constant 0 : i32
    %c0_i32_1 = arith.constant 0 : i32
    return %c0_i32, %c0_i32_0 : i32, i32
  }
  func.func @transform_5(%arg0: i32, %arg1: i32) -> (i32, i32, i32) {
    %c0_i32 = arith.constant 0 : i32
    %c0_i32_0 = arith.constant 0 : i32
    return %arg0, %arg1, %c0_i32 : i32, i32, i32
  }
}

module attributes {stable_mosaic.version = 11 : i64} {
  func.func @_linear_kernel_1k(%arg0: i32, %arg1: i32, %arg2: memref<16x32xbf16, #tpu.memory_space<vmem>>, %arg3: memref<32x128xbf16, #tpu.memory_space<vmem>>, %arg4: memref<1x128xf32, #tpu.memory_space<vmem>>, %arg5: memref<16x128xbf16, #tpu.memory_space<vmem>>) attributes {dimension_semantics = [#tpu.dimension_semantics<parallel>, #tpu.dimension_semantics<parallel>], iteration_bounds = array<i64: 1, 1>, scalar_prefetch = 0 : i64, scratch_operands = 0 : i64, tpu.core_type = #tpu.core_type<tc>, window_params = [{transform_indices = @transform_0, window_bounds = array<i64: 16, 32>}, {transform_indices = @transform_1, window_bounds = array<i64: 32, 128>}, {transform_indices = @transform_2, window_bounds = array<i64: 1, 128>}, {transform_indices = @transform_3, window_bounds = array<i64: 16, 128>}]} {
    %c0 = arith.constant 0 : index
    %c0_0 = arith.constant 0 : index
    %0 = vector.load %arg2[%c0, %c0_0] : memref<16x32xbf16, #tpu.memory_space<vmem>>, vector<16x32xbf16>
    %c0_1 = arith.constant 0 : index
    %c0_2 = arith.constant 0 : index
    %1 = vector.load %arg3[%c0_1, %c0_2] : memref<32x128xbf16, #tpu.memory_space<vmem>>, vector<32x128xbf16>
    %cst = arith.constant dense<0.000000e+00> : vector<16x128xf32>
    %2 = tpu.matmul %0, %1, %cst {dimension_numbers = #tpu.dot_dimension_numbers<[1], [0], [0], [1], [0, 0, 1, 1], [], []>} : vector<16x32xbf16>, vector<32x128xbf16>, vector<16x128xf32> -> vector<16x128xf32>
    %c0_3 = arith.constant 0 : index
    %c0_4 = arith.constant 0 : index
    %3 = vector.load %arg4[%c0_3, %c0_4] : memref<1x128xf32, #tpu.memory_space<vmem>>, vector<1x128xf32>
    %4 = vector.broadcast %3 : vector<1x128xf32> to vector<16x128xf32>
    %5 = arith.addf %2, %4 : vector<16x128xf32>
    %6 = arith.truncf %5 : vector<16x128xf32> to vector<16x128xbf16>
    %c0_5 = arith.constant 0 : index
    %c0_6 = arith.constant 0 : index
    %7 = vector.load %arg5[%c0_5, %c0_6] : memref<16x128xbf16, #tpu.memory_space<vmem>>, vector<16x128xbf16>
    tpu.vector_store %arg5[%c0_5, %c0_6], %6 {strides = array<i32>} : memref<16x128xbf16, #tpu.memory_space<vmem>>, vector<16x128xbf16>,
    return
  }
  func.func @transform_0(%arg0: i32, %arg1: i32) -> (i32, i32) {
    %c0_i32 = arith.constant 0 : i32
    %c0_i32_0 = arith.constant 0 : i32
    return %arg0, %c0_i32 : i32, i32
  }
  func.func @transform_1(%arg0: i32, %arg1: i32) -> (i32, i32) {
    %c0_i32 = arith.constant 0 : i32
    %c0_i32_0 = arith.constant 0 : i32
    return %c0_i32, %arg1 : i32, i32
  }
  func.func @transform_2(%arg0: i32, %arg1: i32) -> (i32, i32) {
    %c0_i32 = arith.constant 0 : i32
    %c0_i32_0 = arith.constant 0 : i32
    return %c0_i32, %arg1 : i32, i32
  }
  func.func @transform_3(%arg0: i32, %arg1: i32) -> (i32, i32) {
    %c0_i32 = arith.constant 0 : i32
    return %arg0, %arg1 : i32, i32
  }
}

module attributes {stable_mosaic.version = 11 : i64} {
  func.func @_attention_kernel(%arg0: i32, %arg1: i32, %arg2: memref<1x1x8x16xbf16, #tpu.memory_space<vmem>>, %arg3: memref<1x1x8x16xbf16, #tpu.memory_space<vmem>>, %arg4: memref<1x1x8x16xbf16, #tpu.memory_space<vmem>>, %arg5: memref<1x1x8xf32, #tpu.memory_space<vmem>>, %arg6: memref<1x1x8x16xbf16, #tpu.memory_space<vmem>>) attributes {dimension_semantics = [#tpu.dimension_semantics<parallel>, #tpu.dimension_semantics<parallel>], iteration_bounds = array<i64: 2, 2>, scalar_prefetch = 0 : i64, scratch_operands = 0 : i64, tpu.core_type = #tpu.core_type<tc>, window_params = [{transform_indices = @transform_0, window_bounds = array<i64: 1, 1, 8, 16>}, {transform_indices = @transform_1, window_bounds = array<i64: 1, 1, 8, 16>}, {transform_indices = @transform_2, window_bounds = array<i64: 1, 1, 8, 16>}, {transform_indices = @transform_3, window_bounds = array<i64: 1, 1, 8>}, {transform_indices = @transform_4, window_bounds = array<i64: 1, 1, 8, 16>}]} {
    %c0 = arith.constant 0 : index
    %c0_0 = arith.constant 0 : index
    %c0_1 = arith.constant 0 : index
    %c0_2 = arith.constant 0 : index
    %0 = vector.load %arg2[%c0, %c0_0, %c0_1, %c0_2] : memref<1x1x8x16xbf16, #tpu.memory_space<vmem>>, vector<1x1x8x16xbf16>
    %1 = vector.shape_cast %0 : vector<1x1x8x16xbf16> to vector<8x16xbf16>
    %cst = arith.constant 2.500000e-01 : bf16
    %2 = vector.broadcast %cst : bf16 to vector<8x16xbf16>
    %3 = arith.mulf %1, %2 : vector<8x16xbf16>
    %c0_3 = arith.constant 0 : index
    %c0_4 = arith.constant 0 : index
    %c0_5 = arith.constant 0 : index
    %c0_6 = arith.constant 0 : index
    %4 = vector.load %arg3[%c0_3, %c0_4, %c0_5, %c0_6] : memref<1x1x8x16xbf16, #tpu.memory_space<vmem>>, vector<1x1x8x16xbf16>
    %5 = vector.shape_cast %4 : vector<1x1x8x16xbf16> to vector<8x16xbf16>
    %c0_7 = arith.constant 0 : index
    %c0_8 = arith.constant 0 : index
    %c0_9 = arith.constant 0 : index
    %c0_10 = arith.constant 0 : index
    %6 = vector.load %arg4[%c0_7, %c0_8, %c0_9, %c0_10] : memref<1x1x8x16xbf16, #tpu.memory_space<vmem>>, vector<1x1x8x16xbf16>
    %7 = vector.shape_cast %6 : vector<1x1x8x16xbf16> to vector<8x16xbf16>
    %cst_11 = arith.constant dense<0.000000e+00> : vector<8x8xf32>
    %8 = tpu.matmul %3, %5, %cst_11 {dimension_numbers = #tpu.dot_dimension_numbers<[1], [1], [0], [0], [0, 0, 1, 0], [], []>} : vector<8x16xbf16>, vector<8x16xbf16>, vector<8x8xf32> -> vector<8x8xf32>
    %c0_12 = arith.constant 0 : index
    %c0_13 = arith.constant 0 : index
    %c0_14 = arith.constant 0 : index
    %9 = vector.load %arg5[%c0_12, %c0_13, %c0_14] : memref<1x1x8xf32, #tpu.memory_space<vmem>>, vector<1x1x8xf32>
    %10 = vector.shape_cast %9 : vector<1x1x8xf32> to vector<1x8xf32>
    %11 = vector.broadcast %10 : vector<1x8xf32> to vector<8x8xf32>
    %12 = arith.addf %8, %11 : vector<8x8xf32>
    %cst_15 = arith.constant dense<0xFF800000> : vector<8xf32>
    %13 = vector.multi_reduction <maximumf>, %12, %cst_15 [1] : vector<8x8xf32> to vector<8xf32>
    %14 = vector.shape_cast %13 : vector<8xf32> to vector<8x1xf32>
    %15 = vector.broadcast %14 : vector<8x1xf32> to vector<8x8xf32>
    %16 = arith.subf %12, %15 : vector<8x8xf32>
    %17 = math.exp %16 : vector<8x8xf32>
    %cst_16 = arith.constant dense<0.000000e+00> : vector<8xf32>
    %18 = vector.multi_reduction <add>, %17, %cst_16 [1] : vector<8x8xf32> to vector<8xf32>
    %19 = vector.shape_cast %18 : vector<8xf32> to vector<8x1xf32>
    %20 = vector.broadcast %19 : vector<8x1xf32> to vector<8x8xf32>
    %21 = arith.divf %17, %20 : vector<8x8xf32>
    %22 = arith.truncf %21 : vector<8x8xf32> to vector<8x8xbf16>
    %cst_17 = arith.constant dense<0.000000e+00> : vector<8x16xf32>
    %23 = tpu.matmul %22, %7, %cst_17 {dimension_numbers = #tpu.dot_dimension_numbers<[1], [0], [0], [1], [0, 0, 1, 1], [], []>} : vector<8x8xbf16>, vector<8x16xbf16>, vector<8x16xf32> -> vector<8x16xf32>
    %24 = arith.truncf %23 : vector<8x16xf32> to vector<8x16xbf16>
    %c0_18 = arith.constant 0 : index
    %c0_19 = arith.constant 0 : index
    %c0_20 = arith.constant 0 : index
    %c0_21 = arith.constant 0 : index
    %25 = vector.load %arg6[%c0_18, %c0_19, %c0_20, %c0_21] : memref<1x1x8x16xbf16, #tpu.memory_space<vmem>>, vector<1x1x8x16xbf16>
    %26 = vector.shape_cast %25 : vector<1x1x8x16xbf16> to vector<8x16xbf16>
    %27 = vector.shape_cast %24 : vector<8x16xbf16> to vector<1x1x8x16xbf16>
    tpu.vector_store %arg6[%c0_18, %c0_19, %c0_20, %c0_21], %27 {strides = array<i32>} : memref<1x1x8x16xbf16, #tpu.memory_space<vmem>>, vector<1x1x8x16xbf16>,
    return
  }
  func.func @transform_0(%arg0: i32, %arg1: i32) -> (i32, i32, i32, i32) {
    %c0_i32 = arith.constant 0 : i32
    %c0_i32_0 = arith.constant 0 : i32
    %c0_i32_1 = arith.constant 0 : i32
    return %arg0, %arg1, %c0_i32, %c0_i32_0 : i32, i32, i32, i32
  }
  func.func @transform_1(%arg0: i32, %arg1: i32) -> (i32, i32, i32, i32) {
    %c0_i32 = arith.constant 0 : i32
    %c0_i32_0 = arith.constant 0 : i32
    %c0_i32_1 = arith.constant 0 : i32
    return %arg0, %arg1, %c0_i32, %c0_i32_0 : i32, i32, i32, i32
  }
  func.func @transform_2(%arg0: i32, %arg1: i32) -> (i32, i32, i32, i32) {
    %c0_i32 = arith.constant 0 : i32
    %c0_i32_0 = arith.constant 0 : i32
    %c0_i32_1 = arith.constant 0 : i32
    return %arg0, %arg1, %c0_i32, %c0_i32_0 : i32, i32, i32, i32
  }
  func.func @transform_3(%arg0: i32, %arg1: i32) -> (i32, i32, i32) {
    %c0_i32 = arith.constant 0 : i32
    %c0_i32_0 = arith.constant 0 : i32
    %c0_i32_1 = arith.constant 0 : i32
    return %arg0, %c0_i32, %c0_i32_0 : i32, i32, i32
  }
  func.func @transform_4(%arg0: i32, %arg1: i32) -> (i32, i32, i32, i32) {
    %c0_i32 = arith.constant 0 : i32
    %c0_i32_0 = arith.constant 0 : i32
    %c0_i32_1 = arith.constant 0 : i32
    return %arg0, %arg1, %c0_i32, %c0_i32_0 : i32, i32, i32, i32
  }
}

module attributes {stable_mosaic.version = 11 : i64} {
  func.func @_linear_ln_kernel_1k(%arg0: i32, %arg1: memref<16x32xbf16, #tpu.memory_space<vmem>>, %arg2: memref<32x32xbf16, #tpu.memory_space<vmem>>, %arg3: memref<1x32xf32, #tpu.memory_space<vmem>>, %arg4: memref<16x32xbf16, #tpu.memory_space<vmem>>, %arg5: memref<1x32xf32, #tpu.memory_space<vmem>>, %arg6: memref<1x32xf32, #tpu.memory_space<vmem>>, %arg7: memref<16x32xbf16, #tpu.memory_space<vmem>>) attributes {dimension_semantics = [#tpu.dimension_semantics<parallel>], iteration_bounds = array<i64: 1>, scalar_prefetch = 0 : i64, scratch_operands = 0 : i64, tpu.core_type = #tpu.core_type<tc>, window_params = [{transform_indices = @transform_0, window_bounds = array<i64: 16, 32>}, {pipeline_mode = #tpu.pipeline_mode<synchronous>, transform_indices = @transform_1, window_bounds = array<i64: 32, 32>}, {pipeline_mode = #tpu.pipeline_mode<synchronous>, transform_indices = @transform_2, window_bounds = array<i64: 1, 32>}, {transform_indices = @transform_3, window_bounds = array<i64: 16, 32>}, {pipeline_mode = #tpu.pipeline_mode<synchronous>, transform_indices = @transform_4, window_bounds = array<i64: 1, 32>}, {pipeline_mode = #tpu.pipeline_mode<synchronous>, transform_indices = @transform_5, window_bounds = array<i64: 1, 32>}, {transform_indices = @transform_6, window_bounds = array<i64: 16, 32>}]} {
    %c0 = arith.constant 0 : index
    %c0_0 = arith.constant 0 : index
    %0 = vector.load %arg1[%c0, %c0_0] : memref<16x32xbf16, #tpu.memory_space<vmem>>, vector<16x32xbf16>
    %c0_1 = arith.constant 0 : index
    %c0_2 = arith.constant 0 : index
    %1 = vector.load %arg2[%c0_1, %c0_2] : memref<32x32xbf16, #tpu.memory_space<vmem>>, vector<32x32xbf16>
    %cst = arith.constant dense<0.000000e+00> : vector<16x32xf32>
    %2 = tpu.matmul %0, %1, %cst {dimension_numbers = #tpu.dot_dimension_numbers<[1], [0], [0], [1], [0, 0, 1, 1], [], []>} : vector<16x32xbf16>, vector<32x32xbf16>, vector<16x32xf32> -> vector<16x32xf32>
    %c0_3 = arith.constant 0 : index
    %c0_4 = arith.constant 0 : index
    %3 = vector.load %arg3[%c0_3, %c0_4] : memref<1x32xf32, #tpu.memory_space<vmem>>, vector<1x32xf32>
    %4 = vector.broadcast %3 : vector<1x32xf32> to vector<16x32xf32>
    %5 = arith.addf %2, %4 : vector<16x32xf32>
    %c0_5 = arith.constant 0 : index
    %c0_6 = arith.constant 0 : index
    %6 = vector.load %arg4[%c0_5, %c0_6] : memref<16x32xbf16, #tpu.memory_space<vmem>>, vector<16x32xbf16>
    %7 = arith.extf %6 : vector<16x32xbf16> to vector<16x32xf32>
    %8 = arith.addf %5, %7 : vector<16x32xf32>
    %cst_7 = arith.constant dense<0.000000e+00> : vector<16xf32>
    %9 = vector.multi_reduction <add>, %8, %cst_7 [1] : vector<16x32xf32> to vector<16xf32>
    %10 = vector.shape_cast %9 : vector<16xf32> to vector<16x1xf32>
    %cst_8 = arith.constant 3.200000e+01 : f32
    %11 = vector.broadcast %cst_8 : f32 to vector<16x1xf32>
    %12 = arith.divf %10, %11 : vector<16x1xf32>
    %13 = vector.broadcast %12 : vector<16x1xf32> to vector<16x32xf32>
    %14 = arith.subf %8, %13 : vector<16x32xf32>
    %15 = arith.mulf %14, %14 : vector<16x32xf32>
    %cst_9 = arith.constant dense<0.000000e+00> : vector<16xf32>
    %16 = vector.multi_reduction <add>, %15, %cst_9 [1] : vector<16x32xf32> to vector<16xf32>
    %17 = vector.shape_cast %16 : vector<16xf32> to vector<16x1xf32>
    %cst_10 = arith.constant 3.200000e+01 : f32
    %18 = vector.broadcast %cst_10 : f32 to vector<16x1xf32>
    %19 = arith.divf %17, %18 : vector<16x1xf32>
    %cst_11 = arith.constant 9.99999996E-13 : f32
    %20 = vector.broadcast %cst_11 : f32 to vector<16x1xf32>
    %21 = arith.addf %19, %20 : vector<16x1xf32>
    %22 = math.rsqrt %21 : vector<16x1xf32>
    %23 = vector.broadcast %12 : vector<16x1xf32> to vector<16x32xf32>
    %24 = arith.subf %8, %23 : vector<16x32xf32>
    %25 = vector.broadcast %22 : vector<16x1xf32> to vector<16x32xf32>
    %26 = arith.mulf %24, %25 : vector<16x32xf32>
    %c0_12 = arith.constant 0 : index
    %c0_13 = arith.constant 0 : index
    %27 = vector.load %arg5[%c0_12, %c0_13] : memref<1x32xf32, #tpu.memory_space<vmem>>, vector<1x32xf32>
    %28 = vector.broadcast %27 : vector<1x32xf32> to vector<16x32xf32>
    %29 = arith.mulf %26, %28 : vector<16x32xf32>
    %c0_14 = arith.constant 0 : index
    %c0_15 = arith.constant 0 : index
    %30 = vector.load %arg6[%c0_14, %c0_15] : memref<1x32xf32, #tpu.memory_space<vmem>>, vector<1x32xf32>
    %31 = vector.broadcast %30 : vector<1x32xf32> to vector<16x32xf32>
    %32 = arith.addf %29, %31 : vector<16x32xf32>
    %33 = arith.truncf %32 : vector<16x32xf32> to vector<16x32xbf16>
    %c0_16 = arith.constant 0 : index
    %c0_17 = arith.constant 0 : index
    %34 = vector.load %arg7[%c0_16, %c0_17] : memref<16x32xbf16, #tpu.memory_space<vmem>>, vector<16x32xbf16>
    tpu.vector_store %arg7[%c0_16, %c0_17], %33 {strides = array<i32>} : memref<16x32xbf16, #tpu.memory_space<vmem>>, vector<16x32xbf16>,
    return
  }
  func.func @transform_0(%arg0: i32) -> (i32, i32) {
    %c0_i32 = arith.constant 0 : i32
    %c0_i32_0 = arith.constant 0 : i32
    return %arg0, %c0_i32 : i32, i32
  }
  func.func @transform_1(%arg0: i32) -> (i32, i32) {
    %c0_i32 = arith.constant 0 : i32
    %c0_i32_0 = arith.constant 0 : i32
    %c0_i32_1 = arith.constant 0 : i32
    return %c0_i32, %c0_i32_0 : i32, i32
  }
  func.func @transform_2(%arg0: i32) -> (i32, i32) {
    %c0_i32 = arith.constant 0 : i32
    %c0_i32_0 = arith.constant 0 : i32
    %c0_i32_1 = arith.constant 0 : i32
    return %c0_i32, %c0_i32_0 : i32, i32
  }
  func.func @transform_3(%arg0: i32) -> (i32, i32) {
    %c0_i32 = arith.constant 0 : i32
    %c0_i32_0 = arith.constant 0 : i32
    return %arg0, %c0_i32 : i32, i32
  }
  func.func @transform_4(%arg0: i32) -> (i32, i32) {
    %c0_i32 = arith.constant 0 : i32
    %c0_i32_0 = arith.constant 0 : i32
    %c0_i32_1 = arith.constant 0 : i32
    return %c0_i32, %c0_i32_0 : i32, i32
  }
  func.func @transform_5(%arg0: i32) -> (i32, i32) {
    %c0_i32 = arith.constant 0 : i32
    %c0_i32_0 = arith.constant 0 : i32
    %c0_i32_1 = arith.constant 0 : i32
    return %c0_i32, %c0_i32_0 : i32, i32
  }
  func.func @transform_6(%arg0: i32) -> (i32, i32) {
    %c0_i32 = arith.constant 0 : i32
    %c0_i32_0 = arith.constant 0 : i32
    return %arg0, %c0_i32 : i32, i32
  }
}

module attributes {stable_mosaic.version = 11 : i64} {
  func.func @_linear_kernel_1k(%arg0: i32, %arg1: i32, %arg2: memref<16x32xbf16, #tpu.memory_space<vmem>>, %arg3: memref<32x128xbf16, #tpu.memory_space<vmem>>, %arg4: memref<1x128xf32, #tpu.memory_space<vmem>>, %arg5: memref<16x128xbf16, #tpu.memory_space<vmem>>) attributes {dimension_semantics = [#tpu.dimension_semantics<parallel>, #tpu.dimension_semantics<parallel>], iteration_bounds = array<i64: 1, 1>, scalar_prefetch = 0 : i64, scratch_operands = 0 : i64, tpu.core_type = #tpu.core_type<tc>, window_params = [{transform_indices = @transform_0, window_bounds = array<i64: 16, 32>}, {transform_indices = @transform_1, window_bounds = array<i64: 32, 128>}, {transform_indices = @transform_2, window_bounds = array<i64: 1, 128>}, {transform_indices = @transform_3, window_bounds = array<i64: 16, 128>}]} {
    %c0 = arith.constant 0 : index
    %c0_0 = arith.constant 0 : index
    %0 = vector.load %arg2[%c0, %c0_0] : memref<16x32xbf16, #tpu.memory_space<vmem>>, vector<16x32xbf16>
    %c0_1 = arith.constant 0 : index
    %c0_2 = arith.constant 0 : index
    %1 = vector.load %arg3[%c0_1, %c0_2] : memref<32x128xbf16, #tpu.memory_space<vmem>>, vector<32x128xbf16>
    %cst = arith.constant dense<0.000000e+00> : vector<16x128xf32>
    %2 = tpu.matmul %0, %1, %cst {dimension_numbers = #tpu.dot_dimension_numbers<[1], [0], [0], [1], [0, 0, 1, 1], [], []>} : vector<16x32xbf16>, vector<32x128xbf16>, vector<16x128xf32> -> vector<16x128xf32>
    %c0_3 = arith.constant 0 : index
    %c0_4 = arith.constant 0 : index
    %3 = vector.load %arg4[%c0_3, %c0_4] : memref<1x128xf32, #tpu.memory_space<vmem>>, vector<1x128xf32>
    %4 = vector.broadcast %3 : vector<1x128xf32> to vector<16x128xf32>
    %5 = arith.addf %2, %4 : vector<16x128xf32>
    %cst_5 = arith.constant 5.000000e-01 : f32
    %6 = vector.broadcast %cst_5 : f32 to vector<16x128xf32>
    %7 = arith.mulf %6, %5 : vector<16x128xf32>
    %cst_6 = arith.constant 4.471500e-02 : f32
    %8 = vector.broadcast %cst_6 : f32 to vector<16x128xf32>
    %9 = arith.mulf %8, %5 : vector<16x128xf32>
    %10 = arith.mulf %9, %5 : vector<16x128xf32>
    %11 = arith.mulf %10, %5 : vector<16x128xf32>
    %12 = arith.addf %5, %11 : vector<16x128xf32>
    %cst_7 = arith.constant 0.797884583 : f32
    %13 = vector.broadcast %cst_7 : f32 to vector<16x128xf32>
    %14 = arith.mulf %13, %12 : vector<16x128xf32>
    %15 = math.tanh %14 : vector<16x128xf32>
    %cst_8 = arith.constant 1.000000e+00 : f32
    %16 = vector.broadcast %cst_8 : f32 to vector<16x128xf32>
    %17 = arith.addf %16, %15 : vector<16x128xf32>
    %18 = arith.mulf %7, %17 : vector<16x128xf32>
    %19 = arith.truncf %18 : vector<16x128xf32> to vector<16x128xbf16>
    %c0_9 = arith.constant 0 : index
    %c0_10 = arith.constant 0 : index
    %20 = vector.load %arg5[%c0_9, %c0_10] : memref<16x128xbf16, #tpu.memory_space<vmem>>, vector<16x128xbf16>
    tpu.vector_store %arg5[%c0_9, %c0_10], %19 {strides = array<i32>} : memref<16x128xbf16, #tpu.memory_space<vmem>>, vector<16x128xbf16>,
    return
  }
  func.func @transform_0(%arg0: i32, %arg1: i32) -> (i32, i32) {
    %c0_i32 = arith.constant 0 : i32
    %c0_i32_0 = arith.constant 0 : i32
    return %arg0, %c0_i32 : i32, i32
  }
  func.func @transform_1(%arg0: i32, %arg1: i32) -> (i32, i32) {
    %c0_i32 = arith.constant 0 : i32
    %c0_i32_0 = arith.constant 0 : i32
    return %c0_i32, %arg1 : i32, i32
  }
  func.func @transform_2(%arg0: i32, %arg1: i32) -> (i32, i32) {
    %c0_i32 = arith.constant 0 : i32
    %c0_i32_0 = arith.constant 0 : i32
    return %c0_i32, %arg1 : i32, i32
  }
  func.func @transform_3(%arg0: i32, %arg1: i32) -> (i32, i32) {
    %c0_i32 = arith.constant 0 : i32
    return %arg0, %arg1 : i32, i32
  }
}

module attributes {stable_mosaic.version = 11 : i64} {
  func.func @_linear_ln_kernel_1k(%arg0: i32, %arg1: memref<16x64xbf16, #tpu.memory_space<vmem>>, %arg2: memref<64x32xbf16, #tpu.memory_space<vmem>>, %arg3: memref<1x32xf32, #tpu.memory_space<vmem>>, %arg4: memref<16x32xbf16, #tpu.memory_space<vmem>>, %arg5: memref<1x32xf32, #tpu.memory_space<vmem>>, %arg6: memref<1x32xf32, #tpu.memory_space<vmem>>, %arg7: memref<16x32xbf16, #tpu.memory_space<vmem>>) attributes {dimension_semantics = [#tpu.dimension_semantics<parallel>], iteration_bounds = array<i64: 1>, scalar_prefetch = 0 : i64, scratch_operands = 0 : i64, tpu.core_type = #tpu.core_type<tc>, window_params = [{transform_indices = @transform_0, window_bounds = array<i64: 16, 64>}, {pipeline_mode = #tpu.pipeline_mode<synchronous>, transform_indices = @transform_1, window_bounds = array<i64: 64, 32>}, {pipeline_mode = #tpu.pipeline_mode<synchronous>, transform_indices = @transform_2, window_bounds = array<i64: 1, 32>}, {transform_indices = @transform_3, window_bounds = array<i64: 16, 32>}, {pipeline_mode = #tpu.pipeline_mode<synchronous>, transform_indices = @transform_4, window_bounds = array<i64: 1, 32>}, {pipeline_mode = #tpu.pipeline_mode<synchronous>, transform_indices = @transform_5, window_bounds = array<i64: 1, 32>}, {transform_indices = @transform_6, window_bounds = array<i64: 16, 32>}]} {
    %c0 = arith.constant 0 : index
    %c0_0 = arith.constant 0 : index
    %0 = vector.load %arg1[%c0, %c0_0] : memref<16x64xbf16, #tpu.memory_space<vmem>>, vector<16x64xbf16>
    %c0_1 = arith.constant 0 : index
    %c0_2 = arith.constant 0 : index
    %1 = vector.load %arg2[%c0_1, %c0_2] : memref<64x32xbf16, #tpu.memory_space<vmem>>, vector<64x32xbf16>
    %cst = arith.constant dense<0.000000e+00> : vector<16x32xf32>
    %2 = tpu.matmul %0, %1, %cst {dimension_numbers = #tpu.dot_dimension_numbers<[1], [0], [0], [1], [0, 0, 1, 1], [], []>} : vector<16x64xbf16>, vector<64x32xbf16>, vector<16x32xf32> -> vector<16x32xf32>
    %c0_3 = arith.constant 0 : index
    %c0_4 = arith.constant 0 : index
    %3 = vector.load %arg3[%c0_3, %c0_4] : memref<1x32xf32, #tpu.memory_space<vmem>>, vector<1x32xf32>
    %4 = vector.broadcast %3 : vector<1x32xf32> to vector<16x32xf32>
    %5 = arith.addf %2, %4 : vector<16x32xf32>
    %c0_5 = arith.constant 0 : index
    %c0_6 = arith.constant 0 : index
    %6 = vector.load %arg4[%c0_5, %c0_6] : memref<16x32xbf16, #tpu.memory_space<vmem>>, vector<16x32xbf16>
    %7 = arith.extf %6 : vector<16x32xbf16> to vector<16x32xf32>
    %8 = arith.addf %5, %7 : vector<16x32xf32>
    %cst_7 = arith.constant dense<0.000000e+00> : vector<16xf32>
    %9 = vector.multi_reduction <add>, %8, %cst_7 [1] : vector<16x32xf32> to vector<16xf32>
    %10 = vector.shape_cast %9 : vector<16xf32> to vector<16x1xf32>
    %cst_8 = arith.constant 3.200000e+01 : f32
    %11 = vector.broadcast %cst_8 : f32 to vector<16x1xf32>
    %12 = arith.divf %10, %11 : vector<16x1xf32>
    %13 = vector.broadcast %12 : vector<16x1xf32> to vector<16x32xf32>
    %14 = arith.subf %8, %13 : vector<16x32xf32>
    %15 = arith.mulf %14, %14 : vector<16x32xf32>
    %cst_9 = arith.constant dense<0.000000e+00> : vector<16xf32>
    %16 = vector.multi_reduction <add>, %15, %cst_9 [1] : vector<16x32xf32> to vector<16xf32>
    %17 = vector.shape_cast %16 : vector<16xf32> to vector<16x1xf32>
    %cst_10 = arith.constant 3.200000e+01 : f32
    %18 = vector.broadcast %cst_10 : f32 to vector<16x1xf32>
    %19 = arith.divf %17, %18 : vector<16x1xf32>
    %cst_11 = arith.constant 9.99999996E-13 : f32
    %20 = vector.broadcast %cst_11 : f32 to vector<16x1xf32>
    %21 = arith.addf %19, %20 : vector<16x1xf32>
    %22 = math.rsqrt %21 : vector<16x1xf32>
    %23 = vector.broadcast %12 : vector<16x1xf32> to vector<16x32xf32>
    %24 = arith.subf %8, %23 : vector<16x32xf32>
    %25 = vector.broadcast %22 : vector<16x1xf32> to vector<16x32xf32>
    %26 = arith.mulf %24, %25 : vector<16x32xf32>
    %c0_12 = arith.constant 0 : index
    %c0_13 = arith.constant 0 : index
    %27 = vector.load %arg5[%c0_12, %c0_13] : memref<1x32xf32, #tpu.memory_space<vmem>>, vector<1x32xf32>
    %28 = vector.broadcast %27 : vector<1x32xf32> to vector<16x32xf32>
    %29 = arith.mulf %26, %28 : vector<16x32xf32>
    %c0_14 = arith.constant 0 : index
    %c0_15 = arith.constant 0 : index
    %30 = vector.load %arg6[%c0_14, %c0_15] : memref<1x32xf32, #tpu.memory_space<vmem>>, vector<1x32xf32>
    %31 = vector.broadcast %30 : vector<1x32xf32> to vector<16x32xf32>
    %32 = arith.addf %29, %31 : vector<16x32xf32>
    %33 = arith.truncf %32 : vector<16x32xf32> to vector<16x32xbf16>
    %c0_16 = arith.constant 0 : index
    %c0_17 = arith.constant 0 : index
    %34 = vector.load %arg7[%c0_16, %c0_17] : memref<16x32xbf16, #tpu.memory_space<vmem>>, vector<16x32xbf16>
    tpu.vector_store %arg7[%c0_16, %c0_17], %33 {strides = array<i32>} : memref<16x32xbf16, #tpu.memory_space<vmem>>, vector<16x32xbf16>,
    return
  }
  func.func @transform_0(%arg0: i32) -> (i32, i32) {
    %c0_i32 = arith.constant 0 : i32
    %c0_i32_0 = arith.constant 0 : i32
    return %arg0, %c0_i32 : i32, i32
  }
  func.func @transform_1(%arg0: i32) -> (i32, i32) {
    %c0_i32 = arith.constant 0 : i32
    %c0_i32_0 = arith.constant 0 : i32
    %c0_i32_1 = arith.constant 0 : i32
    return %c0_i32, %c0_i32_0 : i32, i32
  }
  func.func @transform_2(%arg0: i32) -> (i32, i32) {
    %c0_i32 = arith.constant 0 : i32
    %c0_i32_0 = arith.constant 0 : i32
    %c0_i32_1 = arith.constant 0 : i32
    return %c0_i32, %c0_i32_0 : i32, i32
  }
  func.func @transform_3(%arg0: i32) -> (i32, i32) {
    %c0_i32 = arith.constant 0 : i32
    %c0_i32_0 = arith.constant 0 : i32
    return %arg0, %c0_i32 : i32, i32
  }
  func.func @transform_4(%arg0: i32) -> (i32, i32) {
    %c0_i32 = arith.constant 0 : i32
    %c0_i32_0 = arith.constant 0 : i32
    %c0_i32_1 = arith.constant 0 : i32
    return %c0_i32, %c0_i32_0 : i32, i32
  }
  func.func @transform_5(%arg0: i32) -> (i32, i32) {
    %c0_i32 = arith.constant 0 : i32
    %c0_i32_0 = arith.constant 0 : i32
    %c0_i32_1 = arith.constant 0 : i32
    return %c0_i32, %c0_i32_0 : i32, i32
  }
  func.func @transform_6(%arg0: i32) -> (i32, i32) {
    %c0_i32 = arith.constant 0 : i32
    %c0_i32_0 = arith.constant 0 : i32
    return %arg0, %c0_i32 : i32, i32
  }
}

module attributes {stable_mosaic.version = 11 : i64} {
  func.func @_linear_kernel_1k(%arg0: i32, %arg1: i32, %arg2: memref<16x32xbf16, #tpu.memory_space<vmem>>, %arg3: memref<32x128xbf16, #tpu.memory_space<vmem>>, %arg4: memref<1x128xf32, #tpu.memory_space<vmem>>, %arg5: memref<16x128xf32, #tpu.memory_space<vmem>>) attributes {dimension_semantics = [#tpu.dimension_semantics<parallel>, #tpu.dimension_semantics<parallel>], iteration_bounds = array<i64: 1, 1>, scalar_prefetch = 0 : i64, scratch_operands = 0 : i64, tpu.core_type = #tpu.core_type<tc>, window_params = [{transform_indices = @transform_0, window_bounds = array<i64: 16, 32>}, {transform_indices = @transform_1, window_bounds = array<i64: 32, 128>}, {transform_indices = @transform_2, window_bounds = array<i64: 1, 128>}, {transform_indices = @transform_3, window_bounds = array<i64: 16, 128>}]} {
    %c0 = arith.constant 0 : index
    %c0_0 = arith.constant 0 : index
    %0 = vector.load %arg2[%c0, %c0_0] : memref<16x32xbf16, #tpu.memory_space<vmem>>, vector<16x32xbf16>
    %c0_1 = arith.constant 0 : index
    %c0_2 = arith.constant 0 : index
    %1 = vector.load %arg3[%c0_1, %c0_2] : memref<32x128xbf16, #tpu.memory_space<vmem>>, vector<32x128xbf16>
    %cst = arith.constant dense<0.000000e+00> : vector<16x128xf32>
    %2 = tpu.matmul %0, %1, %cst {dimension_numbers = #tpu.dot_dimension_numbers<[1], [0], [0], [1], [0, 0, 1, 1], [], []>} : vector<16x32xbf16>, vector<32x128xbf16>, vector<16x128xf32> -> vector<16x128xf32>
    %c0_3 = arith.constant 0 : index
    %c0_4 = arith.constant 0 : index
    %3 = vector.load %arg4[%c0_3, %c0_4] : memref<1x128xf32, #tpu.memory_space<vmem>>, vector<1x128xf32>
    %4 = vector.broadcast %3 : vector<1x128xf32> to vector<16x128xf32>
    %5 = arith.addf %2, %4 : vector<16x128xf32>
    %c0_5 = arith.constant 0 : index
    %c0_6 = arith.constant 0 : index
    %6 = vector.load %arg5[%c0_5, %c0_6] : memref<16x128xf32, #tpu.memory_space<vmem>>, vector<16x128xf32>
    tpu.vector_store %arg5[%c0_5, %c0_6], %5 {strides = array<i32>} : memref<16x128xf32, #tpu.memory_space<vmem>>, vector<16x128xf32>,
    return
  }
  func.func @transform_0(%arg0: i32, %arg1: i32) -> (i32, i32) {
    %c0_i32 = arith.constant 0 : i32
    %c0_i32_0 = arith.constant 0 : i32
    return %arg0, %c0_i32 : i32, i32
  }
  func.func @transform_1(%arg0: i32, %arg1: i32) -> (i32, i32) {
    %c0_i32 = arith.constant 0 : i32
    %c0_i32_0 = arith.constant 0 : i32
    return %c0_i32, %arg1 : i32, i32
  }
  func.func @transform_2(%arg0: i32, %arg1: i32) -> (i32, i32) {
    %c0_i32 = arith.constant 0 : i32
    %c0_i32_0 = arith.constant 0 : i32
    return %c0_i32, %arg1 : i32, i32
  }
  func.func @transform_3(%arg0: i32, %arg1: i32) -> (i32, i32) {
    %c0_i32 = arith.constant 0 : i32
    return %arg0, %arg1 : i32, i32
  }
}

</mosaic_0001>

<bundles_post_ra>
// kernel: bert_ner_forward.12
= control target key start
LH: loop header
LB: loop body
LE: loop exit
PB: predicated region body
PF: predicated region fallthrough
CT: control target
= control target key end

     0   :  { %s546_s18 = smov 0   ;;  %s548_s19 = smov 0   ;;  %s597_s0 = inlined_call_operand.vmem [shape: f32[2,8,32], index: 0, kind: input, shape index: {}]   ;;  %s598_s1 = inlined_call_operand.vmem [shape: f32[8,32], index: 1, kind: input, shape index: {}]   ;;  %s599_s2 = inlined_call_operand.vmem [shape: f32[2,8,32], index: 2, kind: input, shape index: {}]   ;;  %s600_s3 = inlined_call_operand.vmem [shape: f32[1,32], index: 3, kind: input, shape index: {}]   ;;  %s601_s4 = inlined_call_operand.vmem [shape: f32[1,32], index: 4, kind: input, shape index: {}]   ;;  %s602_s5 = inlined_call_operand.vmem [shape: bf16[2,8,32], index: 5, kind: output, shape index: {}]  }
   0x1   :  { %s550_s20 = smov 0  }
   0x2 LB: > { %s27_s21 = sadd.s32 1, %s509_s19  ;;  %p454_p0 = scmp.ge.s32.totalorder %s513_s20, 1  ;;  %s513_s20 = sphi %s550_s20, %s15_s20   ;;  %s509_s19 = sphi %s548_s19, %s604_s19   ;;  %s505_s18 = sphi %s546_s18, %s603_s18  }
   0x3   : > { %p29_p1 = scmp.ge.s32.totalorder %s27_s21, 2  ;;  %p228_p2 = scmp.lt.s32.totalorder %s513_s20, 3 }
   0x5   : > { %s606_s21 = smov (%p29_p1, %s27_s21), 0  ;;  %p229_p3 = pnand %p454_p0, %p228_p2 }
   0x6   : > { %p271_p4 = scmp.lt.s32.totalorder (!%p229_p3), %s505_s18, 1 }
   0x7   : > { %232 = sbr.rel (%p229_p3) target bundleno = 291 (0x123), region = 40 }
   0xc   : > { %s608_s18 = smov (!%p271_p4, %s505_s18), 1  ;;  %v297_v0 = vld [vmem:[%s598_s1] sm:$0xff]  ;;  %vm301_vm0 = vcmask 261120   ;;  %v515_v6 = vmov 32.0   ;;  %vm342_vm5 = vcmask 257024  }
   0xd   : > { %s455_s22 = sshll.u32 %s608_s18, 3  ;;  %487 = vrcp.f32 %v515_v6  ;;  %v485_v27 = vld [vmem:[%s600_s3] ss:$0 sm:$0xff]  ;;  %s457_s10 = sshll.u32 %s608_s18, 2 }
   0xe   : > { %s277_s27 = scalar_lea.vmem %s597_s0, %s455_s22  ;;  %s288_s30 = scalar_lea.vmem %s599_s2, %s455_s22  ;;  %v486_v29 = vld [vmem:[%s601_s4] ss:$0 sm:$0xff] }
   0xf   : > { %v296_v1 = vld [vmem:[%s277_s27] sm:$0xff]  ;;  %s295_s13 = scalar_lea.vmem %s602_s5, %s457_s10 }
  0x10   : > { %v299_v2 = vld [vmem:[%s288_s30] sm:$0xff]  ;;  %v298_v3 = vadd.f32 %v297_v0, %v296_v1 }
  0x12   : > { %v300_v4 = vadd.f32 %v299_v2, %v298_v3 }
  0x13   : > { %v488_v7 = vpop.eup %487 }
  0x14   : > { %v302_v5 = vsel %vm301_vm0, %v300_v4, 0.0  ;;  %v306_v8 = vmul.f32 32.0, %v488_v7  ;;  %vm310_vm1 = vweird.f32 %v488_v7 }
  0x15   : > { %303 = vadd.xlane.f32.xlu0 %v302_v5 }
  0x16   : > { %v307_v9 = vsub.f32 1.0, %v306_v8 }
  0x18   : > { %v308_v10 = vmul.f32 %v488_v7, %v307_v9 }
  0x1a   : > { %v309_v11 = vadd.f32 %v488_v7, %v308_v10 }
  0x1c   : > { %v311_v12 = vsel %vm310_vm1, %v488_v7, %v309_v11 }
  0x88   : > { %v304_v13 = vpop.xlane.xlu0 %303 }
  0x89   : > { %v312_v14 = vmul.f32 %v311_v12, %v304_v13 }
  0x8b   : > { %v313_v15 = vsub.f32 %v300_v4, %v312_v14 }
  0x8d   : > { %v314_v16 = vmul.f32 %v313_v15, %v313_v15 }
  0x8f   : > { %v315_v17 = vsel %vm301_vm0, %v314_v16, 0.0 }
  0x90   : > { %316 = vadd.xlane.f32.xlu0 %v315_v17 }
 0x103   : > { %v317_v18 = vpop.xlane.xlu0 %316 }
 0x104   : > { %v318_v19 = vmul.f32 %v317_v18, %v311_v12 }
 0x106   : > { %v319_v20 = vadd.f32 1e-12, %v318_v19 }
 0x108   : > { %489 = vrsqrt.f32 %v319_v20  ;;  %vm326_vm3 = vweird.f32 %v319_v20 }
 0x10e   : > { %v490_v21 = vpop.eup %489 }
 0x10f   : > { %v321_v22 = vmul.f32 %v490_v21, %v319_v20  ;;  %vm327_vm2 = vweird.f32 %v490_v21 }
 0x110   : > { %vm328_vm4 = vmor %vm326_vm3, %vm327_vm2 }
 0x111   : > { %v322_v23 = vmul.f32 %v490_v21, %v321_v22 }
 0x113   : > { %v323_v24 = vmul.f32 0.5, %v322_v23 }
 0x115   : > { %v324_v25 = vsub.f32 1.5, %v323_v24 }
 0x117   : > { %v325_v26 = vmul.f32 %v490_v21, %v324_v25 }
 0x119   : > { %v329_v28 = vsel %vm328_vm4, %v490_v21, %v325_v26 }
 0x11a   : > { %v330_v30 = vmul.f32 %v329_v28, %v313_v15 }
 0x11c   : > { %v335_v31 = vmul.f32 %v485_v27, %v330_v30 }
 0x11e   : > { %v340_v32 = vadd.f32 %v486_v29, %v335_v31 }
 0x120   : > { %v341_v33 = vpack.c.bf16 %v340_v32, %v340_v32 }
 0x122   : > { %343 = vst.msk [vmem:[%s295_s13] sm:$0xf] %vm342_vm5, %v341_v33 }
 0x123 PF: > { %s15_s20 = sadd.s32 1, %s513_s20   ;;  %s603_s18 = smov %s509_s19 }
 0x124   : > { %p12_p5 = scmp.ge.s32.totalorder %s15_s20, 4   ;;  %s604_s19 = smov %s606_s21 }
 0x126   :  { %14 = sbr.rel (!%p12_p5) target bundleno = 2 (0x2), region = 76 }

// kernel: bert_ner_forward.13
= control target key start
LH: loop header
LB: loop body
LE: loop exit
PB: predicated region body
PF: predicated region fallthrough
CT: control target
= control target key end

     0   :  { %vm42_vm0 = vcmask 261120   ;;  %s125_s1 = inlined_call_operand.vmem [shape: bf16[32,128], index: 1, kind: input, shape index: {}]   ;;  %s126_s2 = inlined_call_operand.vmem [shape: f32[1,128], index: 2, kind: input, shape index: {}]   ;;  %s127_s0 = inlined_call_operand.vmem [shape: bf16[16,32], index: 0, kind: input, shape index: {}]   ;;  %s128_s3 = inlined_call_operand.vmem [shape: bf16[16,128], index: 3, kind: output, shape index: {}]  }
   0x1   :  { %v83_v0 = vld [vmem:[%s125_s1 + $0x8] sm:$0xff]  ;;  %v82_v1 = vld [vmem:[%s125_s1] sm:$0xff] }
   0x2   :  { %52 = vmatpush.bf16.msra.mxu0 %v83_v0  ;;  %v81_v2 = vld [vmem:[%s127_s0] sm:$0xff] }
   0x3   :  { %v89_v4 = vld [vmem:[%s126_s2] ss:$0 sm:$0xff] }
   0x6   :  { %53 = vmatpush.bf16.msra.mxu0 %v82_v1 }
   0x9   :  { %80 = vmatmul.msk.bf16.vlgmr.msra.gmra.mxu0 %vm42_vm0, %v81_v2 }
  0x86   :  { %v55_v3 = vpop.f32.mrf.mxu0 }
  0x87   :  { %v56_v6 = vadd.f32 %v89_v4, %v55_v3 }
  0x8e   :  { %v57_v5 = vpop.f32.mrf.mxu0 }
  0x8f   :  { %v58_v7 = vadd.f32 %v89_v4, %v57_v5 }
  0x91   :  { %v87_v8 = vpack.c.bf16 %v58_v7, %v56_v6 }
  0x93   :  { %88 = vst [vmem:[%s128_s3] sm:$0xff] %v87_v8  }

// kernel: bert_ner_forward.14
= control target key start
LH: loop header
LB: loop body
LE: loop exit
PB: predicated region body
PF: predicated region fallthrough
CT: control target
= control target key end

     0   :  { %s643_s15 = smov 0   ;;  %s645_s16 = smov 0   ;;  %s712_s0 = inlined_call_operand.vmem [shape: bf16[2,2,8,16], index: 0, kind: input, shape index: {}]   ;;  %s713_s1 = inlined_call_operand.vmem [shape: bf16[2,2,8,16], index: 1, kind: input, shape index: {}]   ;;  %s714_s2 = inlined_call_operand.vmem [shape: bf16[2,2,8,16], index: 2, kind: input, shape index: {}]   ;;  %s715_s3 = inlined_call_operand.vmem [shape: f32[2,1,8], index: 3, kind: input, shape index: {}]   ;;  %s716_s4 = inlined_call_operand.vmem [shape: bf16[2,2,8,16], index: 4, kind: output, shape index: {}]  }
   0x1   :  { %s647_s17 = smov 0   ;;  %s649_s18 = smov 0  }
   0x2   :  { %s651_s19 = smov 0  }
   0x3 LB: > { %s23_s20 = sadd.s32 1, %s608_s17  ;;  %s26_s21 = sadd.s32 1, %s612_s18  ;;  %s616_s19 = sphi %s651_s19, %s14_s19   ;;  %s612_s18 = sphi %s649_s18, %s720_s18   ;;  %s608_s17 = sphi %s647_s17, %s719_s17   ;;  %s604_s16 = sphi %s645_s16, %s718_s16   ;;  %s600_s15 = sphi %s643_s15, %s717_s15  }
   0x4   : > { %p24_p0 = scmp.ge.s32.totalorder %s23_s20, 2  ;;  %p520_p1 = scmp.ge.s32.totalorder %s616_s19, 1 }
   0x5   : > { %p219_p2 = scmp.lt.s32.totalorder %s616_s19, 5 }
   0x6   : > { %s722_s20 = smov (%p24_p0, %s23_s20), 0  ;;  %s724_s21 = smov (!%p24_p0, %s26_s21), %s612_s18 }
   0x7   : > { %p220_p3 = pnand %p520_p1, %p219_p2  ;;  %p28_p4 = scmp.ge.s32.totalorder %s724_s21, 2 }
   0x8   : > { %p270_p5 = scmp.lt.s32.totalorder (!%p220_p3), %s604_s16, 1  ;;  %p272_p6 = scmp.lt.s32.totalorder (!%p220_p3), %s600_s15, 1 }
   0x9   : > { %s726_s21 = smov (%p28_p4, %s724_s21), 0  ;;  %223 = sbr.rel (%p220_p3) target bundleno = 556 (0x22c), region = 36 }
   0xe   : > { %s728_s16 = smov (!%p270_p5, %s604_s16), 1  ;;  %s730_s15 = smov (!%p272_p6, %s600_s15), 1  ;;  %vm316_vm0 = vcmask 130048   ;;  %vm336_vm1 = vcmask 64512   ;;  %vm365_vm2 = vcmask 1043456   ;;  %vm383_vm7 = vcmask 125952  }
   0xf   : > { %s521_s22 = sshll.u32 %s728_s16, 1  ;;  %s296_s25 = scalar_lea.vmem %s715_s3, %s728_s16 }
  0x10   : > { %s275_s26 = sadd.s32 %s521_s22, %s730_s15  ;;  %v573_v6 = vld [vmem:[%s296_s25] ss:$0 sm:$0xff] }
  0x11   : > { %s676_s27 = sshll.u32 %s275_s26, 2 }
  0x12   : > { %s285_s30 = scalar_lea.vmem %s713_s1, %s676_s27  ;;  %s277_s7 = scalar_lea.vmem %s712_s0, %s676_s27 }
  0x13   : > { %v310_v0 = vld [vmem:[%s285_s30] sm:$0xf]  ;;  %s293_s10 = scalar_lea.vmem %s714_s2, %s676_s27  ;;  %s304_s13 = scalar_lea.vmem %s716_s4, %s676_s27 }
  0x14   : > { %v306_v1 = vld [vmem:[%s277_s7] sm:$0xf]  ;;  %v321_v2 = vsel %vm316_vm0, %v310_v0, 0 }
  0x15   : > { %v307_v3 = vunpack.c.l.bf16 %v306_v1  ;;  %330 = vmatpush.bf16.xpose.msra.mxu0 %v321_v2  ;;  %v311_v16 = vld [vmem:[%s293_s10] sm:$0xf] }
  0x16   : > { %v367_v17 = vsel %vm365_vm2, %v311_v16, 0 }
  0x17   : > { %v308_v4 = vmul.f32 0.25, %v307_v3  ;;  %376 = vmatpush.bf16.msra.mxu1 %v367_v17 }
  0x19   : > { %v309_v5 = vpack.c.bf16 %v308_v4, %v308_v4 }
  0x1c   : > { %529 = vmatmul.msk.bf16.vlgmr.msra.gmra.mxu0 %vm316_vm0, %v309_v5 }
  0x99   : > { %v332_v7 = vpop.f32.mrf.mxu0 }
  0x9a   : > { %v333_v8 = vadd.f32 %v573_v6, %v332_v7 }
  0x9c   : > { %v337_v9 = vsel %vm336_vm1, %v333_v8, -inf }
  0x9d   : > { %338 = vmax.xlane.f32.xlu0 %v337_v9 }
  0xa1   : > { %v334_v10 = vpop.f32.mrf.mxu0 }
 0x110   : > { %v339_v11 = vpop.xlane.xlu0 %338 }
 0x111   : > { %v340_v12 = vsub.f32 %v333_v8, %v339_v11 }
 0x113   : > { %v341_v13 = vmul.f32 1.442695, %v340_v12 }
 0x115   : > { %574 = vpow2.f32 %v341_v13 }
 0x11b   : > { %v575_v14 = vpop.eup %574 }
 0x11c   : > { %v343_v15 = vsel %vm336_vm1, %v575_v14, 0.0 }
 0x11d   : > { %344 = vadd.xlane.f32.xlu0 %v343_v15 }
 0x190   : > { %v345_v18 = vpop.xlane.xlu0 %344 }
 0x191   : > { %576 = vrcp.f32 %v345_v18  ;;  %v357_v22 = vand.u32 2147483648, %v345_v18  ;;  %v355_v24 = vand.u32 2147483647, %v345_v18  ;;  %vm351_vm4 = vweird.f32 %v345_v18 }
 0x193   : > { %v358_v26 = vor.u32 1.1754944e-38, %v357_v22  ;;  %vm356_vm6 = vcmp.eq.f32.partialorder %v355_v24, 8.507059e+37 }
 0x197   : > { %v577_v19 = vpop.eup %576 }
 0x198   : > { %v347_v20 = vmul.f32 %v577_v19, %v345_v18  ;;  %vm352_vm3 = vweird.f32 %v577_v19 }
 0x199   : > { %vm353_vm5 = vmor %vm351_vm4, %vm352_vm3 }
 0x19a   : > { %v348_v21 = vsub.f32 1.0, %v347_v20 }
 0x19c   : > { %v349_v23 = vmul.f32 %v577_v19, %v348_v21 }
 0x19e   : > { %v350_v25 = vadd.f32 %v577_v19, %v349_v23 }
 0x1a0   : > { %v354_v27 = vsel %vm353_vm5, %v577_v19, %v350_v25 }
 0x1a1   : > { %v359_v28 = vsel %vm356_vm6, %v358_v26, %v354_v27 }
 0x1a2   : > { %v360_v29 = vmul.f32 %v575_v14, %v359_v28 }
 0x1a4   : > { %v361_v30 = vpack.c.bf16 %v360_v29, %v360_v29 }
 0x1a6   : > { %530 = vmatmul.msk.bf16.vlgmr.msra.gmra.mxu1 %vm336_vm1, %v361_v30 }
 0x223   : > { %v378_v31 = vpop.f32.mrf.mxu1 }
 0x224   : > { %v382_v32 = vpack.c.bf16 %v378_v31, %v378_v31 }
 0x226   : > { %384 = vst.msk [vmem:[%s304_s13] sm:$0xf] %vm383_vm7, %v382_v32 }
 0x22b   : > { %v380_v33 = vpop.f32.mrf.mxu1 }
 0x22c PF: > { %s14_s19 = sadd.s32 1, %s616_s19   ;;  %s717_s15 = smov %s608_s17 }
 0x22d   : > { %p11_p7 = scmp.ge.s32.totalorder %s14_s19, 6   ;;  %s718_s16 = smov %s612_s18 }
 0x22e   : > { %s719_s17 = smov %s722_s20  ;;  %s720_s18 = smov %s726_s21 }
 0x22f   :  { %13 = sbr.rel (!%p11_p7) target bundleno = 3 (0x3), region = 75 }

// kernel: bert_ner_forward.15
= control target key start
LH: loop header
LB: loop body
LE: loop exit
PB: predicated region body
PF: predicated region fallthrough
CT: control target
= control target key end

     0   :  { %vm51_vm0 = vcmask 261120   ;;  %v177_v15 = vmov 32.0   ;;  %vm140_vm6 = vcmask 257024   ;;  %s245_s1 = inlined_call_operand.vmem [shape: bf16[32,32], index: 1, kind: input, shape index: {}]   ;;  %s246_s2 = inlined_call_operand.vmem [shape: f32[1,32], index: 2, kind: input, shape index: {}]   ;;  %s247_s0 = inlined_call_operand.vmem [shape: bf16[16,32], index: 0, kind: input, shape index: {}]   ;;  %s248_s3 = inlined_call_operand.vmem [shape: bf16[16,32], index: 3, kind: input, shape index: {}]   ;;  %s249_s4 = inlined_call_operand.vmem [shape: f32[1,32], index: 4, kind: input, shape index: {}]   ;;  %s250_s5 = inlined_call_operand.vmem [shape: f32[1,32], index: 5, kind: input, shape index: {}]   ;;  %s251_s6 = inlined_call_operand.vmem [shape: bf16[16,32], index: 6, kind: output, shape index: {}]  }
   0x1   :  { %v162_v0 = vld [vmem:[%s245_s1 + $0x8] sm:$0xff]  ;;  %v161_v1 = vld [vmem:[%s245_s1] sm:$0xff]  ;;  %171 = vrcp.f32 %v177_v15 }
   0x2   :  { %61 = vmatpush.bf16.msra.mxu0 %v162_v0  ;;  %v160_v2 = vld [vmem:[%s247_s0] sm:$0xff] }
   0x3   :  { %v164_v3 = vld [vmem:[%s248_s3] sm:$0xff]  }
   0x4   :  { %v168_v4 = vld [vmem:[%s246_s2] ss:$0 sm:$0xff]  ;;  %v165_v5 = vunpack.c.l.bf16 %v164_v3  ;;  %v166_v10 = vunpack.c.h.bf16 %v164_v3 }
   0x5   :  { %v169_v46 = vld [vmem:[%s249_s4] ss:$0 sm:$0xff] }
   0x6   :  { %62 = vmatpush.bf16.msra.mxu0 %v161_v1  ;;  %v170_v49 = vld [vmem:[%s250_s5] ss:$0 sm:$0xff] }
   0x7   :  { %v172_v16 = vpop.eup %171 }
   0x8   :  { %v82_v17 = vmul.f32 32.0, %v172_v16  ;;  %vm86_vm1 = vweird.f32 %v172_v16 }
   0x9   :  { %159 = vmatmul.msk.bf16.vlgmr.msra.gmra.mxu0 %vm51_vm0, %v160_v2 }
   0xa   :  { %v83_v18 = vsub.f32 1.0, %v82_v17 }
   0xc   :  { %v84_v19 = vmul.f32 %v172_v16, %v83_v18 }
   0xe   :  { %v85_v20 = vadd.f32 %v172_v16, %v84_v19 }
  0x10   :  { %v87_v21 = vsel %vm86_vm1, %v172_v16, %v85_v20 }
  0x86   :  { %v64_v6 = vpop.f32.mrf.mxu0 }
  0x87   :  { %v65_v7 = vadd.f32 %v168_v4, %v64_v6 }
  0x89   :  { %v73_v8 = vadd.f32 %v165_v5, %v65_v7 }
  0x8b   :  { %v75_v9 = vsel %vm51_vm0, %v73_v8, 0.0 }
  0x8c   :  { %76 = vadd.xlane.f32.xlu0 %v75_v9 }
  0x8e   :  { %v66_v11 = vpop.f32.mrf.mxu0 }
  0x8f   :  { %v67_v12 = vadd.f32 %v168_v4, %v66_v11 }
  0x91   :  { %v74_v13 = vadd.f32 %v166_v10, %v67_v12 }
  0x93   :  { %v78_v14 = vsel %vm51_vm0, %v74_v13, 0.0 }
  0x94   :  { %79 = vadd.xlane.f32.xlu0 %v78_v14 }
  0xff   :  { %v77_v22 = vpop.xlane.xlu0 %76 }
 0x100   :  { %v88_v23 = vmul.f32 %v87_v21, %v77_v22 }
 0x102   :  { %v90_v24 = vsub.f32 %v73_v8, %v88_v23 }
 0x104   :  { %v92_v25 = vmul.f32 %v90_v24, %v90_v24 }
 0x106   :  { %v94_v26 = vsel %vm51_vm0, %v92_v25, 0.0 }
 0x107   :  { %95 = vadd.xlane.f32.xlu1 %v94_v26  ;;  %v80_v27 = vpop.xlane.xlu0 %79 }
 0x108   :  { %v89_v28 = vmul.f32 %v87_v21, %v80_v27 }
 0x10a   :  { %v91_v29 = vsub.f32 %v74_v13, %v89_v28 }
 0x10c   :  { %v93_v30 = vmul.f32 %v91_v29, %v91_v29 }
 0x10e   :  { %v97_v31 = vsel %vm51_vm0, %v93_v30, 0.0 }
 0x10f   :  { %98 = vadd.xlane.f32.xlu1 %v97_v31 }
 0x17a   :  { %v96_v32 = vpop.xlane.xlu1 %95 }
 0x17b   :  { %v100_v33 = vmul.f32 %v96_v32, %v87_v21 }
 0x17d   :  { %v102_v34 = vadd.f32 1e-12, %v100_v33 }
 0x17f   :  { %173 = vrsqrt.f32 %v102_v34  ;;  %vm110_vm3 = vweird.f32 %v102_v34 }
 0x182   :  { %v99_v35 = vpop.xlane.xlu1 %98 }
 0x183   :  { %v101_v36 = vmul.f32 %v99_v35, %v87_v21 }
 0x185   :  { %v174_v37 = vpop.eup %173  ;;  %v103_v38 = vadd.f32 1e-12, %v101_v36 }
 0x186   :  { %v105_v39 = vmul.f32 %v174_v37, %v102_v34  ;;  %vm111_vm2 = vweird.f32 %v174_v37 }
 0x187   :  { %175 = vrsqrt.f32 %v103_v38  ;;  %vm112_vm4 = vmor %vm110_vm3, %vm111_vm2  ;;  %vm120_vm7 = vweird.f32 %v103_v38 }
 0x188   :  { %v106_v40 = vmul.f32 %v174_v37, %v105_v39 }
 0x18a   :  { %v107_v41 = vmul.f32 0.5, %v106_v40 }
 0x18c   :  { %v108_v42 = vsub.f32 1.5, %v107_v41 }
 0x18d   :  { %v176_v43 = vpop.eup %175 }
 0x18e   :  { %v109_v44 = vmul.f32 %v174_v37, %v108_v42  ;;  %v115_v45 = vmul.f32 %v176_v43, %v103_v38  ;;  %vm121_vm5 = vweird.f32 %v176_v43 }
 0x18f   :  { %vm122_vm8 = vmor %vm120_vm7, %vm121_vm5 }
 0x190   :  { %v113_v47 = vsel %vm112_vm4, %v174_v37, %v109_v44  ;;  %v116_v48 = vmul.f32 %v176_v43, %v115_v45 }
 0x191   :  { %v124_v50 = vmul.f32 %v113_v47, %v90_v24 }
 0x192   :  { %v117_v51 = vmul.f32 0.5, %v116_v48 }
 0x193   :  { %v130_v52 = vmul.f32 %v169_v46, %v124_v50 }
 0x194   :  { %v118_v53 = vsub.f32 1.5, %v117_v51 }
 0x195   :  { %v136_v54 = vadd.f32 %v170_v49, %v130_v52 }
 0x196   :  { %v119_v55 = vmul.f32 %v176_v43, %v118_v53 }
 0x197   :  { %v138_v56 = vpack.c.bf16 %v136_v54, %v136_v54 }
 0x198   :  { %v123_v57 = vsel %vm122_vm8, %v176_v43, %v119_v55 }
 0x199   :  { %141 = vst.msk [vmem:[%s251_s6] sm:$0xf] %vm140_vm6, %v138_v56  ;;  %v125_v58 = vmul.f32 %v123_v57, %v91_v29 }
 0x19b   :  { %v131_v59 = vmul.f32 %v169_v46, %v125_v58 }
 0x19d   :  { %v137_v60 = vadd.f32 %v170_v49, %v131_v59 }
 0x19f   :  { %v139_v61 = vpack.c.bf16 %v137_v60, %v137_v60 }
 0x1a1   :  { %142 = vst.msk [vmem:[%s251_s6 + $0x4] sm:$0xf] %vm140_vm6, %v139_v61 }

// kernel: bert_ner_forward.16
= control target key start
LH: loop header
LB: loop body
LE: loop exit
PB: predicated region body
PF: predicated region fallthrough
CT: control target
= control target key end

     0   :  { %vm42_vm0 = vcmask 261120   ;;  %s147_s1 = inlined_call_operand.vmem [shape: bf16[32,128], index: 1, kind: input, shape index: {}]   ;;  %s148_s2 = inlined_call_operand.vmem [shape: f32[1,128], index: 2, kind: input, shape index: {}]   ;;  %s149_s0 = inlined_call_operand.vmem [shape: bf16[16,32], index: 0, kind: input, shape index: {}]   ;;  %s150_s3 = inlined_call_operand.vmem [shape: bf16[16,128], index: 3, kind: output, shape index: {}]  }
   0x1   :  { %v101_v0 = vld [vmem:[%s147_s1 + $0x8] sm:$0xff]  ;;  %v100_v1 = vld [vmem:[%s147_s1] sm:$0xff] }
   0x2   :  { %52 = vmatpush.bf16.msra.mxu0 %v101_v0  ;;  %v99_v2 = vld [vmem:[%s149_s0] sm:$0xff] }
   0x3   :  { %v107_v3 = vld [vmem:[%s148_s2] ss:$0 sm:$0xff] }
   0x6   :  { %53 = vmatpush.bf16.msra.mxu0 %v100_v1 }
   0x9   :  { %98 = vmatmul.msk.bf16.vlgmr.msra.gmra.mxu0 %vm42_vm0, %v99_v2 }
  0x86   :  { %v55_v4 = vpop.f32.mrf.mxu0 }
  0x87   :  { %v56_v5 = vadd.f32 %v107_v3, %v55_v4 }
  0x89   :  { %v62_v6 = vmul.f32 0.044715, %v56_v5  ;;  %v60_v21 = vmul.f32 0.5, %v56_v5 }
  0x8b   :  { %v64_v7 = vmul.f32 %v62_v6, %v56_v5 }
  0x8d   :  { %v66_v8 = vmul.f32 %v64_v7, %v56_v5 }
  0x8e   :  { %v57_v9 = vpop.f32.mrf.mxu0 }
  0x8f   :  { %v68_v10 = vadd.f32 %v66_v8, %v56_v5  ;;  %v58_v11 = vadd.f32 %v107_v3, %v57_v9 }
  0x91   :  { %v63_v12 = vmul.f32 0.044715, %v58_v11  ;;  %v70_v13 = vmul.f32 0.7978846, %v68_v10  ;;  %v61_v22 = vmul.f32 0.5, %v58_v11 }
  0x93   :  { %v65_v14 = vmul.f32 %v63_v12, %v58_v11  ;;  %108 = vtanh.f32 %v70_v13 }
  0x95   :  { %v67_v15 = vmul.f32 %v65_v14, %v58_v11 }
  0x97   :  { %v69_v16 = vadd.f32 %v67_v15, %v58_v11 }
  0x99   :  { %v71_v17 = vmul.f32 0.7978846, %v69_v16  ;;  %v109_v18 = vpop.eup %108 }
  0x9a   :  { %v74_v19 = vadd.f32 1.0, %v109_v18 }
  0x9b   :  { %110 = vtanh.f32 %v71_v17 }
  0x9c   :  { %v76_v24 = vmul.f32 %v74_v19, %v60_v21 }
  0xa1   :  { %v111_v20 = vpop.eup %110 }
  0xa2   :  { %v75_v23 = vadd.f32 1.0, %v111_v20 }
  0xa4   :  { %v77_v25 = vmul.f32 %v75_v23, %v61_v22 }
  0xa6   :  { %v105_v26 = vpack.c.bf16 %v77_v25, %v76_v24 }
  0xa8   :  { %106 = vst [vmem:[%s150_s3] sm:$0xff] %v105_v26  }

// kernel: bert_ner_forward.17
= control target key start
LH: loop header
LB: loop body
LE: loop exit
PB: predicated region body
PF: predicated region fallthrough
CT: control target
= control target key end

     0   :  { %vm67_vm0 = vcmask 523264   ;;  %vm91_vm1 = vcmask 261120   ;;  %v204_v17 = vmov 32.0   ;;  %vm157_vm7 = vcmask 257024   ;;  %s277_s1 = inlined_call_operand.vmem [shape: bf16[64,32], index: 1, kind: input, shape index: {}]   ;;  %s278_s2 = inlined_call_operand.vmem [shape: f32[1,32], index: 2, kind: input, shape index: {}]   ;;  %s279_s0 = inlined_call_operand.vmem [shape: bf16[16,64], index: 0, kind: input, shape index: {}]   ;;  %s280_s3 = inlined_call_operand.vmem [shape: bf16[16,32], index: 3, kind: input, shape index: {}]   ;;  %s281_s4 = inlined_call_operand.vmem [shape: f32[1,32], index: 4, kind: input, shape index: {}]   ;;  %s282_s5 = inlined_call_operand.vmem [shape: f32[1,32], index: 5, kind: input, shape index: {}]   ;;  %s283_s6 = inlined_call_operand.vmem [shape: bf16[16,32], index: 6, kind: output, shape index: {}]  }
   0x1   :  { %v189_v0 = vld [vmem:[%s277_s1 + $0x18] sm:$0xff]  ;;  %v188_v1 = vld [vmem:[%s277_s1 + $0x10] sm:$0xff]  ;;  %v187_v2 = vld [vmem:[%s277_s1 + $0x8] sm:$0xff]  ;;  %198 = vrcp.f32 %v204_v17 }
   0x2   :  { %75 = vmatpush.bf16.msra.mxu0 %v189_v0  ;;  %v186_v3 = vld [vmem:[%s277_s1] sm:$0xff] }
   0x3   :  { %v185_v4 = vld [vmem:[%s279_s0] sm:$0xff] }
   0x4   :  { %v191_v5 = vld [vmem:[%s280_s3] sm:$0xff]  }
   0x5   :  { %v195_v6 = vld [vmem:[%s278_s2] ss:$0 sm:$0xff]  ;;  %v192_v7 = vunpack.c.l.bf16 %v191_v5  ;;  %v193_v12 = vunpack.c.h.bf16 %v191_v5 }
   0x6   :  { %76 = vmatpush.bf16.msra.mxu0 %v188_v1  ;;  %v196_v48 = vld [vmem:[%s281_s4] ss:$0 sm:$0xff] }
   0x7   :  { %v199_v18 = vpop.eup %198  ;;  %v197_v51 = vld [vmem:[%s282_s5] ss:$0 sm:$0xff] }
   0x8   :  { %v99_v19 = vmul.f32 32.0, %v199_v18  ;;  %vm103_vm2 = vweird.f32 %v199_v18 }
   0xa   :  { %77 = vmatpush.bf16.msra.mxu0 %v187_v2  ;;  %v100_v20 = vsub.f32 1.0, %v99_v19 }
   0xc   :  { %v101_v21 = vmul.f32 %v199_v18, %v100_v20 }
   0xe   :  { %78 = vmatpush.bf16.msra.mxu0 %v186_v3  ;;  %v102_v22 = vadd.f32 %v199_v18, %v101_v21 }
  0x10   :  { %v104_v23 = vsel %vm103_vm2, %v199_v18, %v102_v22 }
  0x11   :  { %184 = vmatmul.msk.bf16.vlgmr.msra.gmra.mxu0 %vm67_vm0, %v185_v4 }
  0x8e   :  { %v80_v8 = vpop.f32.mrf.mxu0 }
  0x8f   :  { %v81_v9 = vadd.f32 %v195_v6, %v80_v8 }
  0x91   :  { %v89_v10 = vadd.f32 %v192_v7, %v81_v9 }
  0x93   :  { %v92_v11 = vsel %vm91_vm1, %v89_v10, 0.0 }
  0x94   :  { %93 = vadd.xlane.f32.xlu0 %v92_v11 }
  0x96   :  { %v82_v13 = vpop.f32.mrf.mxu0 }
  0x97   :  { %v83_v14 = vadd.f32 %v195_v6, %v82_v13 }
  0x99   :  { %v90_v15 = vadd.f32 %v193_v12, %v83_v14 }
  0x9b   :  { %v95_v16 = vsel %vm91_vm1, %v90_v15, 0.0 }
  0x9c   :  { %96 = vadd.xlane.f32.xlu0 %v95_v16 }
 0x107   :  { %v94_v24 = vpop.xlane.xlu0 %93 }
 0x108   :  { %v105_v25 = vmul.f32 %v104_v23, %v94_v24 }
 0x10a   :  { %v107_v26 = vsub.f32 %v89_v10, %v105_v25 }
 0x10c   :  { %v109_v27 = vmul.f32 %v107_v26, %v107_v26 }
 0x10e   :  { %v111_v28 = vsel %vm91_vm1, %v109_v27, 0.0 }
 0x10f   :  { %112 = vadd.xlane.f32.xlu1 %v111_v28  ;;  %v97_v29 = vpop.xlane.xlu0 %96 }
 0x110   :  { %v106_v30 = vmul.f32 %v104_v23, %v97_v29 }
 0x112   :  { %v108_v31 = vsub.f32 %v90_v15, %v106_v30 }
 0x114   :  { %v110_v32 = vmul.f32 %v108_v31, %v108_v31 }
 0x116   :  { %v114_v33 = vsel %vm91_vm1, %v110_v32, 0.0 }
 0x117   :  { %115 = vadd.xlane.f32.xlu1 %v114_v33 }
 0x182   :  { %v113_v34 = vpop.xlane.xlu1 %112 }
 0x183   :  { %v117_v35 = vmul.f32 %v113_v34, %v104_v23 }
 0x185   :  { %v119_v36 = vadd.f32 1e-12, %v117_v35 }
 0x187   :  { %200 = vrsqrt.f32 %v119_v36  ;;  %vm127_vm4 = vweird.f32 %v119_v36 }
 0x18a   :  { %v116_v37 = vpop.xlane.xlu1 %115 }
 0x18b   :  { %v118_v38 = vmul.f32 %v116_v37, %v104_v23 }
 0x18d   :  { %v201_v39 = vpop.eup %200  ;;  %v120_v40 = vadd.f32 1e-12, %v118_v38 }
 0x18e   :  { %v122_v41 = vmul.f32 %v201_v39, %v119_v36  ;;  %vm128_vm3 = vweird.f32 %v201_v39 }
 0x18f   :  { %202 = vrsqrt.f32 %v120_v40  ;;  %vm129_vm5 = vmor %vm127_vm4, %vm128_vm3  ;;  %vm137_vm8 = vweird.f32 %v120_v40 }
 0x190   :  { %v123_v42 = vmul.f32 %v201_v39, %v122_v41 }
 0x192   :  { %v124_v43 = vmul.f32 0.5, %v123_v42 }
 0x194   :  { %v125_v44 = vsub.f32 1.5, %v124_v43 }
 0x195   :  { %v203_v45 = vpop.eup %202 }
 0x196   :  { %v126_v46 = vmul.f32 %v201_v39, %v125_v44  ;;  %v132_v47 = vmul.f32 %v203_v45, %v120_v40  ;;  %vm138_vm6 = vweird.f32 %v203_v45 }
 0x197   :  { %vm139_vm9 = vmor %vm137_vm8, %vm138_vm6 }
 0x198   :  { %v130_v49 = vsel %vm129_vm5, %v201_v39, %v126_v46  ;;  %v133_v50 = vmul.f32 %v203_v45, %v132_v47 }
 0x199   :  { %v141_v52 = vmul.f32 %v130_v49, %v107_v26 }
 0x19a   :  { %v134_v53 = vmul.f32 0.5, %v133_v50 }
 0x19b   :  { %v147_v54 = vmul.f32 %v196_v48, %v141_v52 }
 0x19c   :  { %v135_v55 = vsub.f32 1.5, %v134_v53 }
 0x19d   :  { %v153_v56 = vadd.f32 %v197_v51, %v147_v54 }
 0x19e   :  { %v136_v57 = vmul.f32 %v203_v45, %v135_v55 }
 0x19f   :  { %v155_v58 = vpack.c.bf16 %v153_v56, %v153_v56 }
 0x1a0   :  { %v140_v59 = vsel %vm139_vm9, %v203_v45, %v136_v57 }
 0x1a1   :  { %158 = vst.msk [vmem:[%s283_s6] sm:$0xf] %vm157_vm7, %v155_v58  ;;  %v142_v60 = vmul.f32 %v140_v59, %v108_v31 }
 0x1a3   :  { %v148_v61 = vmul.f32 %v196_v48, %v142_v60 }
 0x1a5   :  { %v154_v62 = vadd.f32 %v197_v51, %v148_v61 }
 0x1a7   :  { %v156_v63 = vpack.c.bf16 %v154_v62, %v154_v62 }
 0x1a9   :  { %159 = vst.msk [vmem:[%s283_s6 + $0x4] sm:$0xf] %vm157_vm7, %v156_v63 }

// kernel: bert_ner_forward.23
= control target key start
LH: loop header
LB: loop body
LE: loop exit
PB: predicated region body
PF: predicated region fallthrough
CT: control target
= control target key end

     0   :  { %vm42_vm0 = vcmask 261120   ;;  %s121_s1 = inlined_call_operand.vmem [shape: bf16[32,128], index: 1, kind: input, shape index: {}]   ;;  %s122_s2 = inlined_call_operand.vmem [shape: f32[1,128], index: 2, kind: input, shape index: {}]   ;;  %s123_s0 = inlined_call_operand.vmem [shape: bf16[16,32], index: 0, kind: input, shape index: {}]   ;;  %s124_s3 = inlined_call_operand.vmem [shape: f32[16,128], index: 3, kind: output, shape index: {}]  }
   0x1   :  { %v81_v0 = vld [vmem:[%s121_s1 + $0x8] sm:$0xff]  ;;  %v80_v1 = vld [vmem:[%s121_s1] sm:$0xff] }
   0x2   :  { %52 = vmatpush.bf16.msra.mxu0 %v81_v0  ;;  %v79_v2 = vld [vmem:[%s123_s0] sm:$0xff] }
   0x3   :  { %v82_v3 = vld [vmem:[%s122_s2] ss:$0 sm:$0xff] }
   0x6   :  { %53 = vmatpush.bf16.msra.mxu0 %v80_v1 }
   0x9   :  { %78 = vmatmul.msk.bf16.vlgmr.msra.gmra.mxu0 %vm42_vm0, %v79_v2 }
  0x86   :  { %v55_v4 = vpop.f32.mrf.mxu0 }
  0x87   :  { %v56_v5 = vadd.f32 %v82_v3, %v55_v4 }
  0x89   :  { %60 = vst [vmem:[%s124_s3] sm:$0xff] %v56_v5 }
  0x8e   :  { %v57_v6 = vpop.f32.mrf.mxu0 }
  0x8f   :  { %v58_v7 = vadd.f32 %v82_v3, %v57_v6 }
  0x91   :  { %61 = vst [vmem:[%s124_s3 + $0x8] sm:$0xff] %v58_v7 }

</bundles_post_ra>
